<compile_context>
chip_gen: v6e
topology: v6e:2x2x1
jax: 0.10.0
libtpu: 0.0.40
codegen_flags: <defaults>
</compile_context>

<pallas_src>
import functools

import jax
import jax.numpy as jnp
from jax import lax
from jax.experimental import pallas as pl
from jax.experimental.pallas import tpu as pltpu


# -----------------------------------------------------------------------------
# Fused Pallas kernel: all layers of the postnet for one batch element.
#   x_ref : (1, T, Cp)        f32, channel-padded input (padded channels = 0)
#   w_ref : (L, K*Cp, Cp)     bf16, folded (conv*BN) weights, im2col layout
#   b_ref : (L, 1, Cp)        f32, folded biases (padded channels = 0)
#   o_ref : (1, T, Cp)        f32 output (x + postnet(x)), padded channels = 0
# -----------------------------------------------------------------------------
def _postnet_fused_kernel(x_ref, w_ref, b_ref, o_ref, *, K, T, pad, n_layers):
    Cp = x_ref.shape[-1]
    x0 = x_ref[0].astype(jnp.float32)                     # (T, Cp), residual
    zrows = jnp.zeros((pad, Cp), jnp.float32)             # time halo (hoisted)

    h = x0
    for l in range(n_layers):                             # unrolled layer loop
        # Zero "same"-padding along time, entirely in registers/VMEM.
        xp = jnp.concatenate([zrows, h, zrows], axis=0)   # (T + 2*pad, Cp)
        # im2col: one lane-dense (T, K*Cp) tile -> single deep MXU contraction.
        col = jnp.concatenate([xp[k:k + T, :] for k in range(K)], axis=-1)
        acc = jnp.dot(col.astype(jnp.bfloat16), w_ref[l],
                      preferred_element_type=jnp.float32)  # (T, Cp) f32
        acc = acc + b_ref[l]                               # (1, Cp) broadcast
        if l < n_layers - 1:
            h = jnp.tanh(acc)                              # EUP, f32
        else:
            h = acc + x0                                   # residual add
    o_ref[0] = h.astype(o_ref.dtype)


def postnet_pallas(x_nlc_padded, w_stack, b_stack):
    """x_nlc_padded: (B, T, Cp) f32; w_stack: (L, K*Cp, Cp) bf16; b_stack: (L,1,Cp) f32."""
    B, T, Cp = x_nlc_padded.shape
    L, KCp, _ = w_stack.shape
    K = KCp // Cp
    pad = (K - 1) // 2

    kernel = functools.partial(
        _postnet_fused_kernel, K=K, T=T, pad=pad, n_layers=L)

    flops = 2 * B * T * L * K * Cp * Cp
    bytes_accessed = (x_nlc_padded.size * 4 + w_stack.size * 2
                      + b_stack.size * 4 + B * T * Cp * 4)

    return pl.pallas_call(
        kernel,
        out_shape=jax.ShapeDtypeStruct((B, T, Cp), jnp.float32),
        grid_spec=pltpu.PrefetchScalarGridSpec(
            num_scalar_prefetch=0,
            grid=(B,),
            in_specs=[
                pl.BlockSpec((1, T, Cp), lambda b: (b, 0, 0)),    # activation
                pl.BlockSpec((L, KCp, Cp), lambda b: (0, 0, 0)),  # all weights
                pl.BlockSpec((L, 1, Cp), lambda b: (0, 0, 0)),    # all biases
            ],
            out_specs=pl.BlockSpec((1, T, Cp), lambda b: (b, 0, 0)),
        ),
        compiler_params=pltpu.CompilerParams(
            dimension_semantics=("parallel",)),
        cost_estimate=pl.CostEstimate(
            flops=int(flops),
            transcendentals=int(B * T * Cp * (L - 1)),
            bytes_accessed=int(bytes_accessed)),
    )(x_nlc_padded, w_stack, b_stack)


# -----------------------------------------------------------------------------
# Parameter construction (deterministic, synthetic) — matches the PyTorch init
# -----------------------------------------------------------------------------
def init_postnet_params(key, n_mel, postnet_dim, kernel_size, n_convs):
    layers = []
    chans = [n_mel] + [postnet_dim] * (n_convs - 1) + [n_mel]
    for i in range(n_convs):
        cin, cout = chans[i], chans[i + 1]
        key, kw, kb, kg, kbeta = jax.random.split(key, 5)
        gain = 5.0 / 3.0 if i < n_convs - 1 else 1.0   # tanh vs linear w_init_gain
        fan_in = cin * kernel_size
        fan_out = cout * kernel_size
        bound = gain * jnp.sqrt(6.0 / (fan_in + fan_out))  # xavier_uniform
        w = jax.random.uniform(kw, (cout, cin, kernel_size), jnp.float32, -bound, bound)
        b = jax.random.uniform(kb, (cout,), jnp.float32, -0.1, 0.1)
        gamma = 1.0 + 0.05 * jax.random.normal(kg, (cout,), jnp.float32)
        beta = 0.05 * jax.random.normal(kbeta, (cout,), jnp.float32)
        layers.append(dict(w=w, b=b, gamma=gamma, beta=beta,
                           mean=jnp.zeros((cout,), jnp.float32),
                           var=jnp.ones((cout,), jnp.float32), eps=1e-5))
    return layers


def prepare_fused_params(layers, Cp):
    """Fold eval-mode BN into conv weights, pad channels to Cp, flatten for
    im2col, stack across layers, and cast weights to bf16. Done ONCE (hoisted
    out of the forward path)."""
    w_list, b_list = [], []
    K = layers[0]["w"].shape[2]
    for layer in layers:
        w, b = layer["w"], layer["b"]                    # (Cout, Cin, K), (Cout,)
        cout, cin, _ = w.shape
        scale = layer["gamma"] / jnp.sqrt(layer["var"] + layer["eps"])
        w_f = w * scale[:, None, None]
        b_f = (b - layer["mean"]) * scale + layer["beta"]
        w_k = jnp.transpose(w_f, (2, 1, 0))              # (K, Cin, Cout)
        w_k = jnp.pad(w_k, ((0, 0), (0, Cp - cin), (0, Cp - cout)))
        w_list.append(w_k.reshape(K * Cp, Cp))           # im2col layout
        b_list.append(jnp.pad(b_f, (0, Cp - cout)))      # padded chans stay 0
    w_stack = jnp.stack(w_list).astype(jnp.bfloat16)     # (L, K*Cp, Cp)
    b_stack = jnp.stack(b_list).reshape(len(layers), 1, Cp).astype(jnp.float32)
    return w_stack, b_stack


# -----------------------------------------------------------------------------
# PostNet forward (eval mode: dropout = identity; predict_spectrogram=False)
# -----------------------------------------------------------------------------
def postnet_forward(x_ncl, w_stack, b_stack):
    """x_ncl: (B, n_mel, T) as in PyTorch. Returns (B, n_mel, T)."""
    B, C, T = x_ncl.shape
    Cp = w_stack.shape[-1]
    x = jnp.transpose(x_ncl, (0, 2, 1))                  # -> (B, T, C)
    x = jnp.pad(x, ((0, 0), (0, 0), (0, Cp - C)))        # lane-pad channels once
    out = postnet_pallas(x, w_stack, b_stack)            # (B, T, Cp)
    out = out[:, :, :C]                                  # strip channel padding
    # TODO(synk): predict_spectrogram branch uses self.projection, which is not
    # defined in the module's __init__; only predict_spectrogram=False is done.
    return jnp.transpose(out, (0, 2, 1))                 # back to (B, C, T)


# Pure-JAX f32 reference for validation
def postnet_reference(x_ncl, layers):
    x = x_ncl
    inp = x
    n = len(layers)
    for i, layer in enumerate(layers):
        w, b = layer["w"], layer["b"]
        pad = (w.shape[2] - 1) // 2
        y = lax.conv_general_dilated(
            x, w, window_strides=(1,), padding=[(pad, pad)],
            dimension_numbers=("NCH", "OIH", "NCH"),
        ) + b[None, :, None]
        scale = layer["gamma"] / jnp.sqrt(layer["var"] + layer["eps"])
        y = (y - layer["mean"][None, :, None]) * scale[None, :, None] \
            + layer["beta"][None, :, None]
        if i < n - 1:
            y = jnp.tanh(y)
        x = y
    return x + inp


if __name__ == "__main__":
    # Small hparams consistent with the module structure
    B, n_mel, T = 2, 8, 16
    postnet_dim = 32
    postnet_kernel_size = 5
    postnet_n_convolutions = 5

    key = jax.random.PRNGKey(0)
    k_in, k_params = jax.random.split(key)
    x = jax.random.normal(k_in, (B, n_mel, T), jnp.float32)   # NCL, like PyTorch

    layers = init_postnet_params(
        k_params, n_mel, postnet_dim, postnet_kernel_size, postnet_n_convolutions)

    # Hoisted, one-time: fold BN, pad channels to a lane-dense multiple of 128.
    Cp = 128 * ((max(n_mel, postnet_dim) + 127) // 128)
    w_stack, b_stack = prepare_fused_params(layers, Cp)

    fwd = jax.jit(functools.partial(postnet_forward, w_stack=w_stack, b_stack=b_stack))
    out = jax.block_until_ready(fwd(x))

    ref = postnet_reference(x, layers)
    assert out.shape == (B, n_mel, T)
    max_err = jnp.max(jnp.abs(out - ref))
    # bf16 MXU inputs (f32 accumulate) -> expect ~1e-2-level differences vs f32 ref.
    assert jnp.allclose(out, ref, atol=5e-2, rtol=5e-2), f"max abs err {max_err}"

    print("KERNEL_OK")
</pallas_src>

<mosaic_0001>
module attributes {stable_mosaic.version = 11 : i64} {
  func.func @_postnet_fused_kernel(%arg0: i32, %arg1: memref<1x16x128xf32, #tpu.memory_space<vmem>>, %arg2: memref<5x640x128xbf16, #tpu.memory_space<vmem>>, %arg3: memref<5x1x128xf32, #tpu.memory_space<vmem>>, %arg4: memref<1x16x128xf32, #tpu.memory_space<vmem>>) attributes {dimension_semantics = [#tpu.dimension_semantics<parallel>], iteration_bounds = array<i64: 2>, scalar_prefetch = 0 : i64, scratch_operands = 0 : i64, tpu.core_type = #tpu.core_type<tc>, window_params = [{transform_indices = @transform_0, window_bounds = array<i64: 1, 16, 128>}, {pipeline_mode = #tpu.pipeline_mode<synchronous>, transform_indices = @transform_1, window_bounds = array<i64: 5, 640, 128>}, {pipeline_mode = #tpu.pipeline_mode<synchronous>, transform_indices = @transform_2, window_bounds = array<i64: 5, 1, 128>}, {transform_indices = @transform_3, window_bounds = array<i64: 1, 16, 128>}]} {
    %c0 = arith.constant 0 : index
    %c0_0 = arith.constant 0 : index
    %c0_1 = arith.constant 0 : index
    %0 = vector.load %arg1[%c0, %c0_0, %c0_1] : memref<1x16x128xf32, #tpu.memory_space<vmem>>, vector<1x16x128xf32>
    %1 = vector.shape_cast %0 : vector<1x16x128xf32> to vector<16x128xf32>
    %cst = arith.constant 0.000000e+00 : f32
    %2 = vector.broadcast %cst : f32 to vector<2x128xf32>
    %3 = tpu.concatenate %2, %1, %2 in 0 : vector<2x128xf32>, vector<16x128xf32>, vector<2x128xf32> -> vector<20x128xf32>
    %4 = vector.extract_strided_slice %3 {offsets = [0, 0], sizes = [16, 128], strides = [1, 1]} : vector<20x128xf32> to vector<16x128xf32>
    %5 = vector.extract_strided_slice %3 {offsets = [1, 0], sizes = [16, 128], strides = [1, 1]} : vector<20x128xf32> to vector<16x128xf32>
    %6 = vector.extract_strided_slice %3 {offsets = [2, 0], sizes = [16, 128], strides = [1, 1]} : vector<20x128xf32> to vector<16x128xf32>
    %7 = vector.extract_strided_slice %3 {offsets = [3, 0], sizes = [16, 128], strides = [1, 1]} : vector<20x128xf32> to vector<16x128xf32>
    %8 = vector.extract_strided_slice %3 {offsets = [4, 0], sizes = [16, 128], strides = [1, 1]} : vector<20x128xf32> to vector<16x128xf32>
    %9 = tpu.concatenate %4, %5, %6, %7, %8 in 1 : vector<16x128xf32>, vector<16x128xf32>, vector<16x128xf32>, vector<16x128xf32>, vector<16x128xf32> -> vector<16x640xf32>
    %10 = arith.truncf %9 : vector<16x640xf32> to vector<16x640xbf16>
    %c0_2 = arith.constant 0 : index
    %c0_3 = arith.constant 0 : index
    %c0_4 = arith.constant 0 : index
    %11 = vector.load %arg2[%c0_2, %c0_3, %c0_4] : memref<5x640x128xbf16, #tpu.memory_space<vmem>>, vector<1x640x128xbf16>
    %12 = vector.shape_cast %11 : vector<1x640x128xbf16> to vector<640x128xbf16>
    %cst_5 = arith.constant dense<0.000000e+00> : vector<16x128xf32>
    %13 = tpu.matmul %10, %12, %cst_5 {dimension_numbers = #tpu.dot_dimension_numbers<[1], [0], [0], [1], [0, 0, 1, 1], [], []>} : vector<16x640xbf16>, vector<640x128xbf16>, vector<16x128xf32> -> vector<16x128xf32>
    %c0_6 = arith.constant 0 : index
    %c0_7 = arith.constant 0 : index
    %c0_8 = arith.constant 0 : index
    %14 = vector.load %arg3[%c0_6, %c0_7, %c0_8] : memref<5x1x128xf32, #tpu.memory_space<vmem>>, vector<1x1x128xf32>
    %15 = vector.shape_cast %14 : vector<1x1x128xf32> to vector<1x128xf32>
    %16 = vector.broadcast %15 : vector<1x128xf32> to vector<16x128xf32>
    %17 = arith.addf %13, %16 : vector<16x128xf32>
    %18 = math.tanh %17 : vector<16x128xf32>
    %19 = tpu.concatenate %2, %18, %2 in 0 : vector<2x128xf32>, vector<16x128xf32>, vector<2x128xf32> -> vector<20x128xf32>
    %20 = vector.extract_strided_slice %19 {offsets = [0, 0], sizes = [16, 128], strides = [1, 1]} : vector<20x128xf32> to vector<16x128xf32>
    %21 = vector.extract_strided_slice %19 {offsets = [1, 0], sizes = [16, 128], strides = [1, 1]} : vector<20x128xf32> to vector<16x128xf32>
    %22 = vector.extract_strided_slice %19 {offsets = [2, 0], sizes = [16, 128], strides = [1, 1]} : vector<20x128xf32> to vector<16x128xf32>
    %23 = vector.extract_strided_slice %19 {offsets = [3, 0], sizes = [16, 128], strides = [1, 1]} : vector<20x128xf32> to vector<16x128xf32>
    %24 = vector.extract_strided_slice %19 {offsets = [4, 0], sizes = [16, 128], strides = [1, 1]} : vector<20x128xf32> to vector<16x128xf32>
    %25 = tpu.concatenate %20, %21, %22, %23, %24 in 1 : vector<16x128xf32>, vector<16x128xf32>, vector<16x128xf32>, vector<16x128xf32>, vector<16x128xf32> -> vector<16x640xf32>
    %26 = arith.truncf %25 : vector<16x640xf32> to vector<16x640xbf16>
    %c1 = arith.constant 1 : index
    %c0_9 = arith.constant 0 : index
    %c0_10 = arith.constant 0 : index
    %27 = vector.load %arg2[%c1, %c0_9, %c0_10] : memref<5x640x128xbf16, #tpu.memory_space<vmem>>, vector<1x640x128xbf16>
    %28 = vector.shape_cast %27 : vector<1x640x128xbf16> to vector<640x128xbf16>
    %cst_11 = arith.constant dense<0.000000e+00> : vector<16x128xf32>
    %29 = tpu.matmul %26, %28, %cst_11 {dimension_numbers = #tpu.dot_dimension_numbers<[1], [0], [0], [1], [0, 0, 1, 1], [], []>} : vector<16x640xbf16>, vector<640x128xbf16>, vector<16x128xf32> -> vector<16x128xf32>
    %c1_12 = arith.constant 1 : index
    %c0_13 = arith.constant 0 : index
    %c0_14 = arith.constant 0 : index
    %30 = vector.load %arg3[%c1_12, %c0_13, %c0_14] : memref<5x1x128xf32, #tpu.memory_space<vmem>>, vector<1x1x128xf32>
    %31 = vector.shape_cast %30 : vector<1x1x128xf32> to vector<1x128xf32>
    %32 = vector.broadcast %31 : vector<1x128xf32> to vector<16x128xf32>
    %33 = arith.addf %29, %32 : vector<16x128xf32>
    %34 = math.tanh %33 : vector<16x128xf32>
    %35 = tpu.concatenate %2, %34, %2 in 0 : vector<2x128xf32>, vector<16x128xf32>, vector<2x128xf32> -> vector<20x128xf32>
    %36 = vector.extract_strided_slice %35 {offsets = [0, 0], sizes = [16, 128], strides = [1, 1]} : vector<20x128xf32> to vector<16x128xf32>
    %37 = vector.extract_strided_slice %35 {offsets = [1, 0], sizes = [16, 128], strides = [1, 1]} : vector<20x128xf32> to vector<16x128xf32>
    %38 = vector.extract_strided_slice %35 {offsets = [2, 0], sizes = [16, 128], strides = [1, 1]} : vector<20x128xf32> to vector<16x128xf32>
    %39 = vector.extract_strided_slice %35 {offsets = [3, 0], sizes = [16, 128], strides = [1, 1]} : vector<20x128xf32> to vector<16x128xf32>
    %40 = vector.extract_strided_slice %35 {offsets = [4, 0], sizes = [16, 128], strides = [1, 1]} : vector<20x128xf32> to vector<16x128xf32>
    %41 = tpu.concatenate %36, %37, %38, %39, %40 in 1 : vector<16x128xf32>, vector<16x128xf32>, vector<16x128xf32>, vector<16x128xf32>, vector<16x128xf32> -> vector<16x640xf32>
    %42 = arith.truncf %41 : vector<16x640xf32> to vector<16x640xbf16>
    %c2 = arith.constant 2 : index
    %c0_15 = arith.constant 0 : index
    %c0_16 = arith.constant 0 : index
    %43 = vector.load %arg2[%c2, %c0_15, %c0_16] : memref<5x640x128xbf16, #tpu.memory_space<vmem>>, vector<1x640x128xbf16>
    %44 = vector.shape_cast %43 : vector<1x640x128xbf16> to vector<640x128xbf16>
    %cst_17 = arith.constant dense<0.000000e+00> : vector<16x128xf32>
    %45 = tpu.matmul %42, %44, %cst_17 {dimension_numbers = #tpu.dot_dimension_numbers<[1], [0], [0], [1], [0, 0, 1, 1], [], []>} : vector<16x640xbf16>, vector<640x128xbf16>, vector<16x128xf32> -> vector<16x128xf32>
    %c2_18 = arith.constant 2 : index
    %c0_19 = arith.constant 0 : index
    %c0_20 = arith.constant 0 : index
    %46 = vector.load %arg3[%c2_18, %c0_19, %c0_20] : memref<5x1x128xf32, #tpu.memory_space<vmem>>, vector<1x1x128xf32>
    %47 = vector.shape_cast %46 : vector<1x1x128xf32> to vector<1x128xf32>
    %48 = vector.broadcast %47 : vector<1x128xf32> to vector<16x128xf32>
    %49 = arith.addf %45, %48 : vector<16x128xf32>
    %50 = math.tanh %49 : vector<16x128xf32>
    %51 = tpu.concatenate %2, %50, %2 in 0 : vector<2x128xf32>, vector<16x128xf32>, vector<2x128xf32> -> vector<20x128xf32>
    %52 = vector.extract_strided_slice %51 {offsets = [0, 0], sizes = [16, 128], strides = [1, 1]} : vector<20x128xf32> to vector<16x128xf32>
    %53 = vector.extract_strided_slice %51 {offsets = [1, 0], sizes = [16, 128], strides = [1, 1]} : vector<20x128xf32> to vector<16x128xf32>
    %54 = vector.extract_strided_slice %51 {offsets = [2, 0], sizes = [16, 128], strides = [1, 1]} : vector<20x128xf32> to vector<16x128xf32>
    %55 = vector.extract_strided_slice %51 {offsets = [3, 0], sizes = [16, 128], strides = [1, 1]} : vector<20x128xf32> to vector<16x128xf32>
    %56 = vector.extract_strided_slice %51 {offsets = [4, 0], sizes = [16, 128], strides = [1, 1]} : vector<20x128xf32> to vector<16x128xf32>
    %57 = tpu.concatenate %52, %53, %54, %55, %56 in 1 : vector<16x128xf32>, vector<16x128xf32>, vector<16x128xf32>, vector<16x128xf32>, vector<16x128xf32> -> vector<16x640xf32>
    %58 = arith.truncf %57 : vector<16x640xf32> to vector<16x640xbf16>
    %c3 = arith.constant 3 : index
    %c0_21 = arith.constant 0 : index
    %c0_22 = arith.constant 0 : index
    %59 = vector.load %arg2[%c3, %c0_21, %c0_22] : memref<5x640x128xbf16, #tpu.memory_space<vmem>>, vector<1x640x128xbf16>
    %60 = vector.shape_cast %59 : vector<1x640x128xbf16> to vector<640x128xbf16>
    %cst_23 = arith.constant dense<0.000000e+00> : vector<16x128xf32>
    %61 = tpu.matmul %58, %60, %cst_23 {dimension_numbers = #tpu.dot_dimension_numbers<[1], [0], [0], [1], [0, 0, 1, 1], [], []>} : vector<16x640xbf16>, vector<640x128xbf16>, vector<16x128xf32> -> vector<16x128xf32>
    %c3_24 = arith.constant 3 : index
    %c0_25 = arith.constant 0 : index
    %c0_26 = arith.constant 0 : index
    %62 = vector.load %arg3[%c3_24, %c0_25, %c0_26] : memref<5x1x128xf32, #tpu.memory_space<vmem>>, vector<1x1x128xf32>
    %63 = vector.shape_cast %62 : vector<1x1x128xf32> to vector<1x128xf32>
    %64 = vector.broadcast %63 : vector<1x128xf32> to vector<16x128xf32>
    %65 = arith.addf %61, %64 : vector<16x128xf32>
    %66 = math.tanh %65 : vector<16x128xf32>
    %67 = tpu.concatenate %2, %66, %2 in 0 : vector<2x128xf32>, vector<16x128xf32>, vector<2x128xf32> -> vector<20x128xf32>
    %68 = vector.extract_strided_slice %67 {offsets = [0, 0], sizes = [16, 128], strides = [1, 1]} : vector<20x128xf32> to vector<16x128xf32>
    %69 = vector.extract_strided_slice %67 {offsets = [1, 0], sizes = [16, 128], strides = [1, 1]} : vector<20x128xf32> to vector<16x128xf32>
    %70 = vector.extract_strided_slice %67 {offsets = [2, 0], sizes = [16, 128], strides = [1, 1]} : vector<20x128xf32> to vector<16x128xf32>
    %71 = vector.extract_strided_slice %67 {offsets = [3, 0], sizes = [16, 128], strides = [1, 1]} : vector<20x128xf32> to vector<16x128xf32>
    %72 = vector.extract_strided_slice %67 {offsets = [4, 0], sizes = [16, 128], strides = [1, 1]} : vector<20x128xf32> to vector<16x128xf32>
    %73 = tpu.concatenate %68, %69, %70, %71, %72 in 1 : vector<16x128xf32>, vector<16x128xf32>, vector<16x128xf32>, vector<16x128xf32>, vector<16x128xf32> -> vector<16x640xf32>
    %74 = arith.truncf %73 : vector<16x640xf32> to vector<16x640xbf16>
    %c4 = arith.constant 4 : index
    %c0_27 = arith.constant 0 : index
    %c0_28 = arith.constant 0 : index
    %75 = vector.load %arg2[%c4, %c0_27, %c0_28] : memref<5x640x128xbf16, #tpu.memory_space<vmem>>, vector<1x640x128xbf16>
    %76 = vector.shape_cast %75 : vector<1x640x128xbf16> to vector<640x128xbf16>
    %cst_29 = arith.constant dense<0.000000e+00> : vector<16x128xf32>
    %77 = tpu.matmul %74, %76, %cst_29 {dimension_numbers = #tpu.dot_dimension_numbers<[1], [0], [0], [1], [0, 0, 1, 1], [], []>} : vector<16x640xbf16>, vector<640x128xbf16>, vector<16x128xf32> -> vector<16x128xf32>
    %c4_30 = arith.constant 4 : index
    %c0_31 = arith.constant 0 : index
    %c0_32 = arith.constant 0 : index
    %78 = vector.load %arg3[%c4_30, %c0_31, %c0_32] : memref<5x1x128xf32, #tpu.memory_space<vmem>>, vector<1x1x128xf32>
    %79 = vector.shape_cast %78 : vector<1x1x128xf32> to vector<1x128xf32>
    %80 = vector.broadcast %79 : vector<1x128xf32> to vector<16x128xf32>
    %81 = arith.addf %77, %80 : vector<16x128xf32>
    %82 = arith.addf %81, %1 : vector<16x128xf32>
    %c0_33 = arith.constant 0 : index
    %c0_34 = arith.constant 0 : index
    %c0_35 = arith.constant 0 : index
    %83 = vector.load %arg4[%c0_33, %c0_34, %c0_35] : memref<1x16x128xf32, #tpu.memory_space<vmem>>, vector<1x16x128xf32>
    %84 = vector.shape_cast %83 : vector<1x16x128xf32> to vector<16x128xf32>
    %85 = vector.shape_cast %82 : vector<16x128xf32> to vector<1x16x128xf32>
    tpu.vector_store %arg4[%c0_33, %c0_34, %c0_35], %85 {strides = array<i32>} : memref<1x16x128xf32, #tpu.memory_space<vmem>>, vector<1x16x128xf32>,
    return
  }
  func.func @transform_0(%arg0: i32) -> (i32, i32, i32) {
    %c0_i32 = arith.constant 0 : i32
    %c0_i32_0 = arith.constant 0 : i32
    %c0_i32_1 = arith.constant 0 : i32
    return %arg0, %c0_i32, %c0_i32_0 : i32, i32, i32
  }
  func.func @transform_1(%arg0: i32) -> (i32, i32, i32) {
    %c0_i32 = arith.constant 0 : i32
    %c0_i32_0 = arith.constant 0 : i32
    %c0_i32_1 = arith.constant 0 : i32
    %c0_i32_2 = arith.constant 0 : i32
    return %c0_i32, %c0_i32_0, %c0_i32_1 : i32, i32, i32
  }
  func.func @transform_2(%arg0: i32) -> (i32, i32, i32) {
    %c0_i32 = arith.constant 0 : i32
    %c0_i32_0 = arith.constant 0 : i32
    %c0_i32_1 = arith.constant 0 : i32
    %c0_i32_2 = arith.constant 0 : i32
    return %c0_i32, %c0_i32_0, %c0_i32_1 : i32, i32, i32
  }
  func.func @transform_3(%arg0: i32) -> (i32, i32, i32) {
    %c0_i32 = arith.constant 0 : i32
    %c0_i32_0 = arith.constant 0 : i32
    %c0_i32_1 = arith.constant 0 : i32
    return %arg0, %c0_i32, %c0_i32_0 : i32, i32, i32
  }
}

</mosaic_0001>

<bundles_post_ra>
// kernel: postnet_forward.1
= control target key start
LH: loop header
LB: loop body
LE: loop exit
PB: predicated region body
PF: predicated region fallthrough
CT: control target
= control target key end

     0   :  { %8 = vsyncpa [#allocation3], 0  ;;  %s3671_s12 = smov 0   ;;  %s3858_s0 = inlined_call_operand.vmem [shape: f32[2,16,128], index: 0, kind: input, shape index: {}]   ;;  %s3859_s1 = inlined_call_operand.hbm [shape: bf16[5,640,128], index: 1, kind: input, shape index: {}]   ;;  %s3860_s2 = inlined_call_operand.vmem [shape: f32[5,1,128], index: 2, kind: input, shape index: {}]   ;;  %s3861_s3 = inlined_call_operand.vmem [shape: f32[2,16,128], index: 3, kind: output, shape index: {}]  }
   0x1 LB: > { %s3677_s13 = sadd.s32 4294967295, %s3643_s12   ;;  %p2758_p0 = scmp.ge.s32.totalorder %s3643_s12, 1  ;;  %s3643_s12 = sphi %s3671_s12, %s14_s12  }
   0x2   : > { %p113_p1 = scmp.lt.s32.totalorder %s3643_s12, 3  ;;  %s3645_s14 = smov [#allocation2]  }
   0x3   : > { %s125_s15 = sshll.u32 %s3645_s14, 4  ;;  %p3373_p3 = scmp.eq.s32.totalorder %s3677_s13, 0  ;;  %s126_s15 = int_to_ptr.vmem [resolvable:$true] %s125_s15 }
   0x4   : > { %p3681_p2 = pnand %p2758_p0, %p113_p1  ;;  %s3618_s17 = scalar_lea.vmem %s126_s15, 25600 }
   0x5   : > { %p3619_p7 = scmp.ne.s32.totalorder %s126_s15, %s3618_s17  ;;  %p3626_p10 = scmp.lt.s32.totalorder %s126_s15, %s126_s15 }
   0x6   : > { %p3369_p4 = pneg %p3681_p2  ;;  %p3627_p11 = scmp.lt.s32.totalorder %s3618_s17, %s3618_s17 }
   0x8   : > { %p3370_p5 = pnand %p3373_p3, %p3369_p4  ;;  %p3628_p12 = por %p3627_p11, %p3626_p10 }
   0xa   : > { %p3609_p6 = pneg %p3370_p5 }
   0xc   : > { %p3621_p8 = pnand %p3619_p7, %p3609_p6 }
   0xe   : > { %p3622_p9 = pneg %p3621_p8 }
  0x10   : > { %p3629_p13 = pnand %p3628_p12, %p3622_p9 }
  0x12   : > { %3632 = shalt.err (!%p3629_p13)
}
  0x13   : > { %s3646_s18 = smov 64   ;;  %s3647_s19 = smov 4  }
  0x14   : > { %3372 = dma.hbm_to_vmem [thread:$0]  (!%p3370_p5), %s3859_s1, 25600, %s126_s15, [#allocation3], %s3646_s18, %s3646_s18, %s3647_s19  }
  0x15   : > { %152 = sbr.rel (%p3681_p2) target bundleno = 1310 (0x51e), region = 32 }
  0x1a   : > { %3638 = dma.done.wait (%p3373_p3), [#allocation3], 25600  }
  0x1b   : > { %3640 = vsyncadd (%p3373_p3), [#allocation3], 4294941696  ;;  %v3389_v0 = vld [vmem:[#allocation2 + $0x78] sm:$0xff]   ;;  %v3393_v4 = vld [vmem:[#allocation2 + $0x70] sm:$0xff]   ;;  %p176_p0 = scmp.lt.s32.totalorder %s3677_s13, 1  ;;  %vm191_vm0 = vcmask 1041408  }
  0x1c   : > { %v3390_v1 = vld [vmem:[#allocation2 + $0x38] sm:$0xff]   ;;  %3000 = vmatprep.subr.bf16.mxu0 %v3389_v0  ;;  %v3394_v5 = vld [vmem:[#allocation2 + $0x30] sm:$0xff]   ;;  %v3397_v8 = vld [vmem:[#allocation2 + $0x68] sm:$0xff]   ;;  %vm202_vm1 = vcmask 1046528   ;;  %v3648_v36 = vmov 0.0   ;;  %vm218_vm2 = vcmask 1044480  }
  0x1d   : > { %v3391_v2 = vld [vmem:[#allocation2 + $0xf8] sm:$0xff]   ;;  %3001 = vmatpush3.bf16.msra.mxu0 %v3390_v1  ;;  %v3395_v6 = vld [vmem:[#allocation2 + $0xf0] sm:$0xff]   ;;  %v3398_v9 = vld [vmem:[#allocation2 + $0x28] sm:$0xff]   ;;  %s3866_s13 = smov (!%p176_p0, %s3677_s13), 1  ;;  %vm210_vm4 = vcmask 1045504   ;;  %vm3649_vm5 = vmmov 1  }
  0x1e   : > { %v3392_v3 = vld [vmem:[#allocation2 + $0xb8] sm:$0xff]   ;;  %3022 = vmatprep.subr.bf16.mxu1 %v3391_v2  ;;  %3002 = vmatprep.subr.bf16.mxu0 %v3393_v4  ;;  %v3396_v7 = vld [vmem:[#allocation2 + $0xb0] sm:$0xff]   ;;  %v3399_v10 = vld [vmem:[#allocation2 + $0xe8] sm:$0xff]   ;;  %s2998_s22 = sshll.u32 %s3866_s13, 4  ;;  %vm3650_vm7 = vmmov 0   ;;  %vm226_vm8 = vcmask 1043456  }
  0x1f   : > { %3023 = vmatpush3.bf16.msra.mxu1 %v3392_v3  ;;  %v3400_v11 = vld [vmem:[#allocation2 + $0xa8] sm:$0xff]   ;;  %v3401_v12 = vld [vmem:[#allocation2 + $0x60] sm:$0xff]   ;;  %v3405_v16 = vld [vmem:[#allocation2 + $0x58] sm:$0xff]   ;;  %s3709_s25 = scalar_lea.vmem %s3858_s0, %s2998_s22  ;;  %s185_s11 = scalar_lea.vmem %s3861_s3, %s2998_s22 }
  0x20   : > { %3024 = vmatprep.subr.bf16.mxu1 %v3395_v6  ;;  %v3402_v13 = vld [vmem:[#allocation2 + $0x20] sm:$0xff]   ;;  %v3406_v17 = vld [vmem:[#allocation2 + $0x18] sm:$0xff]   ;;  %v3409_v20 = vld [vmem:[#allocation2 + $0x50] sm:$0xff]  }
  0x21   : > { %3003 = vmatpush3.bf16.msra.mxu0 %v3394_v5  ;;  %v3403_v14 = vld [vmem:[#allocation2 + $0xe0] sm:$0xff]   ;;  %v3407_v18 = vld [vmem:[#allocation2 + $0xd8] sm:$0xff]   ;;  %v3410_v21 = vld [vmem:[#allocation2 + $0x10] sm:$0xff]  }
  0x22   : > { %3004 = vmatprep.subr.bf16.mxu0 %v3397_v8  ;;  %v3404_v15 = vld [vmem:[#allocation2 + $0xa0] sm:$0xff]   ;;  %v3408_v19 = vld [vmem:[#allocation2 + $0x98] sm:$0xff]   ;;  %v3411_v22 = vld [vmem:[#allocation2 + $0xd0] sm:$0xff]  }
  0x23   : > { %3025 = vmatpush3.bf16.msra.mxu1 %v3396_v7  ;;  %v3412_v23 = vld [vmem:[#allocation2 + $0x90] sm:$0xff]   ;;  %v3413_v24 = vld [vmem:[#allocation2 + $0x48] sm:$0xff]   ;;  %v3417_v28 = vld [vmem:[#allocation2 + $0x40] sm:$0xff]  }
  0x24   : > { %3026 = vmatprep.subr.bf16.mxu1 %v3399_v10  ;;  %v3414_v25 = vld [vmem:[#allocation2 + $0x8] sm:$0xff]   ;;  %v3418_v29 = vld [vmem:[#allocation2] sm:$0xff]   ;;  %vm2808_vm3 = vmneg %vm191_vm0 }
  0x25   : > { %3005 = vmatpush3.bf16.msra.mxu0 %v3398_v9  ;;  %v3415_v26 = vld [vmem:[#allocation2 + $0xc8] sm:$0xff]   ;;  %v3419_v30 = vld [vmem:[#allocation2 + $0xc0] sm:$0xff]   ;;  %vm3720_vm6 = vmpackc.low %vm3649_vm5, %vm2808_vm3 }
  0x26   : > { %3006 = vmatprep.subr.bf16.mxu0 %v3401_v12  ;;  %v3416_v27 = vld [vmem:[#allocation2 + $0x88] sm:$0xff]   ;;  %v187_v31 = vld [vmem:[%s3709_s25] sm:$0xff]  ;;  %v3421_v56 = vld [vmem:[#allocation2 + $0x138] sm:$0xff]  }
  0x27   : > { %3027 = vmatpush3.bf16.msra.mxu1 %v3400_v11  ;;  %v188_v32 = vld [vmem:[%s3709_s25 + $0x8] sm:$0xff]  ;;  %v192_v33 = vrot.slane %v187_v31, 6  ;;  %v3420_v35 = vld [vmem:[#allocation2 + $0x80] sm:$0xff]   ;;  %v3422_v61 = vld [vmem:[#allocation2 + $0x130] sm:$0xff]  }
  0x28   : > { %3028 = vmatprep.subr.bf16.mxu1 %v3403_v14  ;;  %v193_v34 = vrot.slane %v188_v32, 6  ;;  %v3423_v1 = vld [vmem:[#allocation2 + $0x128] sm:$0xff]   ;;  %v3424_v2 = vld [vmem:[#allocation2 + $0x120] sm:$0xff]   ;;  %v3425_v3 = vld [vmem:[#allocation2 + $0x118] sm:$0xff]  }
  0x29   : > { %3007 = vmatpush3.bf16.msra.mxu0 %v3402_v13  ;;  %v198_v38 = vsel %vm191_vm0, 0.0, %v192_v33  ;;  %v3426_v4 = vld [vmem:[#allocation2 + $0x110] sm:$0xff]   ;;  %v3427_v5 = vld [vmem:[#allocation2 + $0x108] sm:$0xff]   ;;  %v3428_v6 = vld [vmem:[#allocation2 + $0x100] sm:$0xff]  }
  0x2a   : > { %3008 = vmatprep.subr.bf16.mxu0 %v3405_v16  ;;  %v194_v37 = vsel %vm191_vm0, %v192_v33, %v193_v34  ;;  %v199_v39 = vsel %vm191_vm0, %v193_v34, 0.0  ;;  %v203_v40 = vrot.slane %v198_v38, 1  ;;  %v219_v44 = vrot.slane %v198_v38, 3  ;;  %v3429_v10 = vld [vmem:[#allocation2 + $0x1b8] sm:$0xff]   ;;  %v3433_v14 = vld [vmem:[#allocation2 + $0x1b0] sm:$0xff]   ;;  %v3453_v34 = vld [vmem:[#allocation2 + $0x188] sm:$0xff]  }
  0x2b   : > { %3029 = vmatpush3.bf16.msra.mxu1 %v3404_v15  ;;  %v204_v41 = vrot.slane %v194_v37, 1  ;;  %v206_v42 = vrot.slane %v199_v39, 1  ;;  %v2810_v43 = vpack.c.bf16 %v194_v37, %v192_v33  ;;  %v220_v45 = vrot.slane %v194_v37, 3  ;;  %v3430_v11 = vld [vmem:[#allocation2 + $0x178] sm:$0xff]   ;;  %v3434_v15 = vld [vmem:[#allocation2 + $0x170] sm:$0xff]  }
  0x2c   : > { %3030 = vmatprep.subr.bf16.mxu1 %v3407_v18  ;;  %v222_v46 = vrot.slane %v199_v39, 3  ;;  %v211_v47 = vrot.slane %v198_v38, 2  ;;  %v212_v51 = vrot.slane %v194_v37, 2  ;;  %v214_v52 = vrot.slane %v199_v39, 2  ;;  %v3431_v12 = vld [vmem:[#allocation2 + $0x238] sm:$0xff]   ;;  %v3435_v16 = vld [vmem:[#allocation2 + $0x230] sm:$0xff]  }
  0x2d   : > { %3009 = vmatpush3.bf16.msra.mxu0 %v3406_v17  ;;  %v205_v48 = vsel %vm202_vm1, %v203_v40, %v204_v41  ;;  %v207_v49 = vsel %vm202_vm1, %v204_v41, %v206_v42  ;;  %v221_v54 = vsel %vm218_vm2, %v219_v44, %v220_v45  ;;  %v227_v62 = vrot.slane %v198_v38, 4  ;;  %v3432_v13 = vld [vmem:[#allocation2 + $0x1f8] sm:$0xff]   ;;  %v3436_v17 = vld [vmem:[#allocation2 + $0x1f0] sm:$0xff]   ;;  %v3437_v18 = vld [vmem:[#allocation2 + $0x1a8] sm:$0xff]  }
  0x2e   : > { %3010 = vmatprep.subr.bf16.mxu0 %v3409_v20  ;;  %v235_v53 = vpack.c.bf16 %v207_v49, %v205_v48  ;;  %v223_v55 = vsel %vm218_vm2, %v220_v45, %v222_v46  ;;  %v213_v58 = vsel %vm210_vm4, %v211_v47, %v212_v51  ;;  %v215_v59 = vsel %vm210_vm4, %v212_v51, %v214_v52  ;;  %v3439_v20 = vld [vmem:[#allocation2 + $0x228] sm:$0xff]   ;;  %v3450_v31 = vld [vmem:[#allocation2 + $0x150] sm:$0xff]   ;;  %v3458_v40 = vld [vmem:[#allocation2 + $0x140] sm:$0xff]  }
  0x2f   : > { %3031 = vmatpush3.bf16.msra.mxu1 %v3408_v19  ;;  %v237_v57 = vpack.c.bf16 %v223_v55, %v221_v54  ;;  %v236_v60 = vpack.c.bf16 %v215_v59, %v213_v58  ;;  %v228_v63 = vrot.slane %v194_v37, 4  ;;  %v230_v0 = vrot.slane %v199_v39, 4  ;;  %v3438_v19 = vld [vmem:[#allocation2 + $0x168] sm:$0xff]   ;;  %v3451_v32 = vld [vmem:[#allocation2 + $0x210] sm:$0xff]   ;;  %v3457_v39 = vld [vmem:[#allocation2 + $0x180] sm:$0xff]  }
  0x30   : > { %3032 = vmatprep.subr.bf16.mxu1 %v3411_v22  ;;  %598 = vmatprep.mubr.bf16.mxu0 %v235_v53  ;;  %v3441_v22 = vld [vmem:[#allocation2 + $0x1a0] sm:$0xff]   ;;  %v3452_v33 = vld [vmem:[#allocation2 + $0x1d0] sm:$0xff]   ;;  %v3455_v37 = vld [vmem:[#allocation2 + $0x208] sm:$0xff]  }
  0x31   : > { %3011 = vmatpush3.bf16.msra.mxu0 %v3410_v21  ;;  %639 = vmatprep.mubr.bf16.mxu1 %v237_v57  ;;  %v229_v7 = vsel %vm226_vm8, %v227_v62, %v228_v63  ;;  %v231_v8 = vsel %vm226_vm8, %v228_v63, %v230_v0  ;;  %v3440_v21 = vld [vmem:[#allocation2 + $0x1e8] sm:$0xff]   ;;  %v3459_v41 = vld [vmem:[#allocation2 + $0x200] sm:$0xff]   ;;  %v3586_v50 = vld [vmem:[#allocation2 + $0x610] sm:$0xff]  }
  0x32   : > { %3012 = vmatprep.subr.bf16.mxu0 %v3413_v24  ;;  %v238_v9 = vpack.c.bf16 %v231_v8, %v229_v7  ;;  %v3443_v24 = vld [vmem:[#allocation2 + $0x220] sm:$0xff]   ;;  %v3456_v38 = vld [vmem:[#allocation2 + $0x1c8] sm:$0xff]  }
  0x33   : > { %3033 = vmatpush3.bf16.msra.mxu1 %v3412_v23  ;;  %v3442_v23 = vld [vmem:[#allocation2 + $0x160] sm:$0xff]  }
  0x34   : > { %3034 = vmatprep.subr.bf16.mxu1 %v3415_v26  ;;  %v3445_v26 = vld [vmem:[#allocation2 + $0x198] sm:$0xff]   ;;  %v3460_v42 = vld [vmem:[#allocation2 + $0x1c0] sm:$0xff]  }
  0x35   : > { %3013 = vmatpush3.bf16.msra.mxu0 %v3414_v25  ;;  %v3444_v25 = vld [vmem:[#allocation2 + $0x1e0] sm:$0xff]  }
  0x36   : > { %3014 = vmatprep.subr.bf16.mxu0 %v3417_v28  ;;  %v3447_v28 = vld [vmem:[#allocation2 + $0x218] sm:$0xff]   ;;  %v2767_v49 = vld [vmem:[%s3860_s2] ss:$0 sm:$0xff] }
  0x37   : > { %3035 = vmatpush3.bf16.msra.mxu1 %v3416_v27  ;;  %v3446_v27 = vld [vmem:[#allocation2 + $0x158] sm:$0xff]  }
  0x38   : > { %3036 = vmatprep.subr.bf16.mxu1 %v3419_v30  ;;  %v3449_v30 = vld [vmem:[#allocation2 + $0x190] sm:$0xff]  }
  0x39   : > { %3015 = vmatpush3.bf16.msra.mxu0 %v3418_v29  ;;  %v3448_v29 = vld [vmem:[#allocation2 + $0x1d8] sm:$0xff]  }
  0x3a   : > { %3265 = vmatprep.subr.bf16.mxu0 %v3648_v36 }
  0x3b   : > { %3037 = vmatpush3.bf16.msra.mxu1 %v3420_v35  ;;  %v3454_v35 = vld [vmem:[#allocation2 + $0x148] sm:$0xff]  }
  0x3c   : > { %2811 = vmatmul.mubr.msk.bf16.vlgmr.msra.gmra.mxu0 %vm3720_vm6, %v2810_v43  ;;  %3053 = vmatprep.subr.bf16.mxu1 %v3429_v10 }
  0x3d   : > { %3266 = vmatpush3.bf16.msra.mxu0 %v3421_v56  ;;  %3281 = vmatprep.mubr.msk.bf16.mxu0 %vm3650_vm7, %v3648_v36 }
  0x3e   : > { %640 = vmatmul.mubr.bf16.vlgmr.msra.gmra.mxu1 %v236_v60  ;;  %3267 = vmatprep.subr.bf16.mxu0 %v3648_v36 }
  0x3f   : > { %3054 = vmatpush3.bf16.msra.mxu1 %v3430_v11 }
  0x40   : > { %3055 = vmatprep.subr.bf16.mxu1 %v3433_v14 }
  0x41   : > { %3268 = vmatpush3.bf16.msra.mxu0 %v3422_v61 }
  0x42   : > { %3269 = vmatprep.subr.bf16.mxu0 %v3648_v36 }
  0x43   : > { %3056 = vmatpush3.bf16.msra.mxu1 %v3434_v15 }
  0x44   : > { %3057 = vmatprep.subr.bf16.mxu1 %v3437_v18 }
  0x45   : > { %3270 = vmatpush3.bf16.msra.mxu0 %v3423_v1 }
  0x46   : > { %3271 = vmatprep.subr.bf16.mxu0 %v3648_v36 }
  0x47   : > { %3058 = vmatpush3.bf16.msra.mxu1 %v3438_v19 }
  0x48   : > { %3059 = vmatprep.subr.bf16.mxu1 %v3441_v22 }
  0x49   : > { %3272 = vmatpush3.bf16.msra.mxu0 %v3424_v2 }
  0x4a   : > { %3273 = vmatprep.subr.bf16.mxu0 %v3648_v36 }
  0x4b   : > { %3060 = vmatpush3.bf16.msra.mxu1 %v3442_v23 }
  0x4c   : > { %3061 = vmatprep.subr.bf16.mxu1 %v3445_v26 }
  0x4d   : > { %3274 = vmatpush3.bf16.msra.mxu0 %v3425_v3 }
  0x4e   : > { %3275 = vmatprep.subr.bf16.mxu0 %v3648_v36 }
  0x4f   : > { %3062 = vmatpush3.bf16.msra.mxu1 %v3446_v27 }
  0x50   : > { %3063 = vmatprep.subr.bf16.mxu1 %v3449_v30  ;;  %v3462_v30 = vld [vmem:[#allocation2 + $0x270] sm:$0xff]  }
  0x51   : > { %3276 = vmatpush3.bf16.msra.mxu0 %v3426_v4 }
  0x52   : > { %3277 = vmatprep.subr.bf16.mxu0 %v3648_v36 }
  0x53   : > { %3064 = vmatpush3.bf16.msra.mxu1 %v3450_v31  ;;  %v3463_v31 = vld [vmem:[#allocation2 + $0x268] sm:$0xff]  }
  0x54   : > { %3065 = vmatprep.subr.bf16.mxu1 %v3453_v34  ;;  %v3466_v34 = vld [vmem:[#allocation2 + $0x250] sm:$0xff]  }
  0x55   : > { %3278 = vmatpush3.bf16.msra.mxu0 %v3427_v5 }
  0x56   : > { %3279 = vmatprep.subr.bf16.mxu0 %v3648_v36 }
  0x57   : > { %3066 = vmatpush3.bf16.msra.mxu1 %v3454_v35  ;;  %v3467_v35 = vld [vmem:[#allocation2 + $0x248] sm:$0xff]  }
  0x58   : > { %3067 = vmatprep.subr.bf16.mxu1 %v3457_v39  ;;  %v3468_v39 = vld [vmem:[#allocation2 + $0x240] sm:$0xff]  }
  0x59   : > { %3280 = vmatpush3.bf16.msra.mxu0 %v3428_v6 }
  0x5a   : > { %3075 = vmatprep.subr.bf16.mxu0 %v3431_v12 }
  0x5b   : > { %3068 = vmatpush3.bf16.msra.mxu1 %v3458_v40 }
  0x5c   : > { %3282 = vmatmul.mubr.bf16.vlgmr.msra.gmra.mxu0 %v238_v9  ;;  %3285 = vmatprep.subr.bf16.mxu1 %v3648_v36 }
  0x5d   : > { %3076 = vmatpush3.bf16.msra.mxu0 %v3432_v13 }
  0x5e   : > { %3077 = vmatprep.subr.bf16.mxu0 %v3435_v16 }
  0x61   : > { %3078 = vmatpush3.bf16.msra.mxu0 %v3436_v17 }
  0x62   : > { %3079 = vmatprep.subr.bf16.mxu0 %v3439_v20 }
  0x65   : > { %3080 = vmatpush3.bf16.msra.mxu0 %v3440_v21 }
  0x66   : > { %3081 = vmatprep.subr.bf16.mxu0 %v3443_v24 }
  0x69   : > { %3082 = vmatpush3.bf16.msra.mxu0 %v3444_v25  ;;  %v3461_v25 = vld [vmem:[#allocation2 + $0x278] sm:$0xff]  }
  0x6a   : > { %3083 = vmatprep.subr.bf16.mxu0 %v3447_v28 }
  0x6d   : > { %3084 = vmatpush3.bf16.msra.mxu0 %v3448_v29 }
  0x6e   : > { %3085 = vmatprep.subr.bf16.mxu0 %v3451_v32  ;;  %v3464_v32 = vld [vmem:[#allocation2 + $0x260] sm:$0xff]  }
  0x71   : > { %3086 = vmatpush3.bf16.msra.mxu0 %v3452_v33  ;;  %v3465_v33 = vld [vmem:[#allocation2 + $0x258] sm:$0xff]  }
  0x72   : > { %3087 = vmatprep.subr.bf16.mxu0 %v3455_v37 }
  0x75   : > { %3088 = vmatpush3.bf16.msra.mxu0 %v3456_v38 }
  0x76   : > { %3089 = vmatprep.subr.bf16.mxu0 %v3459_v41 }
  0x79   : > { %3090 = vmatpush3.bf16.msra.mxu0 %v3460_v42 }
  0xfc   : > { %v3016_v43 = vpop.f32.mrf.mxu0 }
  0xfe   : > { %v3017_v44 = vpop.f32.mrf.mxu0  ;;  %v3038_v45 = vpop.f32.mrf.mxu1 }
  0xff   : > { %v3018_v48 = vadd.f32 %v3017_v44, %v3016_v43  ;;  %v3469_v44 = vld [vmem:[#allocation2 + $0x2f8] sm:$0xff]  }
 0x100   : > { %v3019_v46 = vpop.f32.mrf.mxu0  ;;  %v3039_v47 = vpop.f32.mrf.mxu1  ;;  %3106 = vmatprep.subr.bf16.mxu0 %v3469_v44 }
 0x101   : > { %v601_v53 = vadd.f32 %v3018_v48, %v2767_v49  ;;  %v3040_v54 = vadd.f32 %v3039_v47, %v3038_v45  ;;  %v3470_v45 = vld [vmem:[#allocation2 + $0x2b8] sm:$0xff]   ;;  %v3473_v48 = vld [vmem:[#allocation2 + $0x2f0] sm:$0xff]  }
 0x102   : > { %v3020_v51 = vpop.f32.mrf.mxu0  ;;  %v3041_v52 = vpop.f32.mrf.mxu1  ;;  %v3472_v47 = vld [vmem:[#allocation2 + $0x338] sm:$0xff]  }
 0x103   : > { %v3021_v55 = vadd.f32 %v3020_v51, %v3019_v46  ;;  %v642_v59 = vadd.f32 %v3040_v54, %v601_v53  ;;  %v3471_v46 = vld [vmem:[#allocation2 + $0x378] sm:$0xff]   ;;  %v3475_v51 = vld [vmem:[#allocation2 + $0x370] sm:$0xff]   ;;  %v3477_v53 = vld [vmem:[#allocation2 + $0x2e8] sm:$0xff]  }
 0x104   : > { %v3042_v56 = vpop.f32.mrf.mxu1  ;;  %v3478_v54 = vld [vmem:[#allocation2 + $0x2a8] sm:$0xff]  }
 0x105   : > { %v604_v57 = vadd.f32 %v3021_v55, %v2767_v49  ;;  %v3043_v58 = vadd.f32 %v3042_v56, %v3041_v52  ;;  %v3474_v49 = vld [vmem:[#allocation2 + $0x2b0] sm:$0xff]   ;;  %v3479_v55 = vld [vmem:[#allocation2 + $0x368] sm:$0xff]  }
 0x106   : > { %v3476_v52 = vld [vmem:[#allocation2 + $0x330] sm:$0xff]   ;;  %v3480_v56 = vld [vmem:[#allocation2 + $0x328] sm:$0xff]  }
 0x107   : > { %v645_v63 = vadd.f32 %v3043_v58, %v604_v57  ;;  %v3481_v57 = vld [vmem:[#allocation2 + $0x2e0] sm:$0xff]  }
 0x108   : > { %v3482_v58 = vld [vmem:[#allocation2 + $0x2a0] sm:$0xff]  }
 0x11c   : > { %v682_v60 = vpop.f32.mrf.mxu0 }
 0x11d   : > { %v683_v61 = vadd.f32 %v682_v60, %v642_v59  ;;  %v3483_v59 = vld [vmem:[#allocation2 + $0x360] sm:$0xff]  }
 0x11e   : > { %v3283_v62 = vpop.f32.mrf.mxu0  ;;  %v3484_v60 = vld [vmem:[#allocation2 + $0x320] sm:$0xff]  }
 0x11f   : > { %3589 = vtanh.f32 %v683_v61  ;;  %v3485_v61 = vld [vmem:[#allocation2 + $0x2d8] sm:$0xff]  }
 0x120   : > { %v685_v0 = vpop.f32.mrf.mxu0  ;;  %v3486_v62 = vld [vmem:[#allocation2 + $0x298] sm:$0xff]  }
 0x121   : > { %v686_v1 = vadd.f32 %v685_v0, %v645_v63  ;;  %v3487_v63 = vld [vmem:[#allocation2 + $0x358] sm:$0xff]  }
 0x122   : > { %v3284_v2 = vpop.f32.mrf.mxu0  ;;  %v3488_v0 = vld [vmem:[#allocation2 + $0x318] sm:$0xff]  }
 0x123   : > { %3591 = vtanh.f32 %v686_v1  ;;  %v3489_v1 = vld [vmem:[#allocation2 + $0x2d0] sm:$0xff]  }
 0x124   : > { %v3490_v2 = vld [vmem:[#allocation2 + $0x290] sm:$0xff]  }
 0x12c   : > { %v3590_v3 = vpop.eup %3589 }
 0x12d   : > { %v693_v4 = vrot.slane %v3590_v3, 6  ;;  %v3491_v3 = vld [vmem:[#allocation2 + $0x350] sm:$0xff]  }
 0x12f   : > { %v699_v6 = vsel %vm191_vm0, 0.0, %v693_v4 }
 0x130   : > { %v3592_v5 = vpop.eup %3591  ;;  %v703_v10 = vrot.slane %v699_v6, 1  ;;  %v717_v14 = vrot.slane %v699_v6, 3  ;;  %v710_v17 = vrot.slane %v699_v6, 2  ;;  %v724_v40 = vrot.slane %v699_v6, 4  ;;  %v3494_v6 = vld [vmem:[#allocation2 + $0x288] sm:$0xff]  }
 0x131   : > { %v694_v7 = vrot.slane %v3592_v5, 6  ;;  %v3493_v5 = vld [vmem:[#allocation2 + $0x2c8] sm:$0xff]  }
 0x133   : > { %v695_v8 = vsel %vm191_vm0, %v693_v4, %v694_v7  ;;  %v700_v9 = vsel %vm191_vm0, %v694_v7, 0.0  ;;  %v3495_v7 = vld [vmem:[#allocation2 + $0x348] sm:$0xff]  }
 0x134   : > { %v713_v11 = vrot.slane %v700_v9, 2  ;;  %v704_v12 = vrot.slane %v695_v8, 1  ;;  %v706_v13 = vrot.slane %v700_v9, 1  ;;  %v718_v15 = vrot.slane %v695_v8, 3 }
 0x135   : > { %v720_v16 = vrot.slane %v700_v9, 3  ;;  %v711_v18 = vrot.slane %v695_v8, 2  ;;  %v2856_v27 = vpack.c.bf16 %v695_v8, %v693_v4  ;;  %v727_v37 = vrot.slane %v700_v9, 4  ;;  %v3492_v4 = vld [vmem:[#allocation2 + $0x310] sm:$0xff]   ;;  %v3497_v9 = vld [vmem:[#allocation2 + $0x2c0] sm:$0xff]  }
 0x136   : > { %v705_v19 = vsel %vm202_vm1, %v703_v10, %v704_v12  ;;  %v707_v20 = vsel %vm202_vm1, %v704_v12, %v706_v13  ;;  %v719_v22 = vsel %vm218_vm2, %v717_v14, %v718_v15  ;;  %v725_v38 = vrot.slane %v695_v8, 4  ;;  %v3496_v8 = vld [vmem:[#allocation2 + $0x308] sm:$0xff]   ;;  %v3498_v10 = vld [vmem:[#allocation2 + $0x280] sm:$0xff]  }
 0x137   : > { %v732_v21 = vpack.c.bf16 %v707_v20, %v705_v19  ;;  %v721_v23 = vsel %vm218_vm2, %v718_v15, %v720_v16  ;;  %v712_v24 = vsel %vm210_vm4, %v710_v17, %v711_v18  ;;  %v714_v28 = vsel %vm210_vm4, %v711_v18, %v713_v11  ;;  %v3499_v11 = vld [vmem:[#allocation2 + $0x340] sm:$0xff]  }
 0x138   : > { %v734_v26 = vpack.c.bf16 %v721_v23, %v719_v22  ;;  %v733_v29 = vpack.c.bf16 %v714_v28, %v712_v24  ;;  %v726_v41 = vsel %vm226_vm8, %v724_v40, %v725_v38  ;;  %v728_v42 = vsel %vm226_vm8, %v725_v38, %v727_v37  ;;  %v3500_v12 = vld [vmem:[#allocation2 + $0x300] sm:$0xff]  }
 0x139   : > { %1097 = vmatprep.mubr.bf16.mxu1 %v732_v21  ;;  %v735_v43 = vpack.c.bf16 %v728_v42, %v726_v41  ;;  %v2813_v19 = vld [vmem:[%s3860_s2 + $0x1] ss:$0 sm:$0xff] }
 0x13a   : > { %1138 = vmatprep.mubr.bf16.mxu0 %v734_v26  ;;  %2857 = vmatmul.mubr.msk.bf16.vlgmr.msra.gmra.mxu1 %vm3720_vm6, %v2856_v27 }
 0x13b   : > { %1139 = vmatmul.mubr.bf16.vlgmr.msra.gmra.mxu0 %v733_v29  ;;  %3286 = vmatpush3.bf16.msra.mxu1 %v3461_v25 }
 0x13c   : > { %3287 = vmatprep.subr.bf16.mxu1 %v3648_v36  ;;  %3301 = vmatprep.mubr.msk.bf16.mxu1 %vm3650_vm7, %v3648_v36 }
 0x13d   : > { %3107 = vmatpush3.bf16.msra.mxu0 %v3470_v45 }
 0x13e   : > { %3108 = vmatprep.subr.bf16.mxu0 %v3473_v48 }
 0x13f   : > { %3288 = vmatpush3.bf16.msra.mxu1 %v3462_v30 }
 0x140   : > { %3289 = vmatprep.subr.bf16.mxu1 %v3648_v36 }
 0x141   : > { %3109 = vmatpush3.bf16.msra.mxu0 %v3474_v49 }
 0x142   : > { %3110 = vmatprep.subr.bf16.mxu0 %v3477_v53 }
 0x143   : > { %3290 = vmatpush3.bf16.msra.mxu1 %v3463_v31 }
 0x144   : > { %3291 = vmatprep.subr.bf16.mxu1 %v3648_v36 }
 0x145   : > { %3111 = vmatpush3.bf16.msra.mxu0 %v3478_v54 }
 0x146   : > { %3112 = vmatprep.subr.bf16.mxu0 %v3481_v57 }
 0x147   : > { %3292 = vmatpush3.bf16.msra.mxu1 %v3464_v32 }
 0x148   : > { %3293 = vmatprep.subr.bf16.mxu1 %v3648_v36 }
 0x149   : > { %3113 = vmatpush3.bf16.msra.mxu0 %v3482_v58 }
 0x14a   : > { %3114 = vmatprep.subr.bf16.mxu0 %v3485_v61 }
 0x14b   : > { %3294 = vmatpush3.bf16.msra.mxu1 %v3465_v33 }
 0x14c   : > { %3295 = vmatprep.subr.bf16.mxu1 %v3648_v36 }
 0x14d   : > { %3115 = vmatpush3.bf16.msra.mxu0 %v3486_v62 }
 0x14e   : > { %3116 = vmatprep.subr.bf16.mxu0 %v3489_v1  ;;  %v3502_v1 = vld [vmem:[#allocation2 + $0x3b0] sm:$0xff]  }
 0x14f   : > { %3296 = vmatpush3.bf16.msra.mxu1 %v3466_v34 }
 0x150   : > { %3297 = vmatprep.subr.bf16.mxu1 %v3648_v36 }
 0x151   : > { %3117 = vmatpush3.bf16.msra.mxu0 %v3490_v2  ;;  %v3503_v2 = vld [vmem:[#allocation2 + $0x3a8] sm:$0xff]  }
 0x152   : > { %3118 = vmatprep.subr.bf16.mxu0 %v3493_v5  ;;  %v3506_v5 = vld [vmem:[#allocation2 + $0x390] sm:$0xff]  }
 0x153   : > { %3298 = vmatpush3.bf16.msra.mxu1 %v3467_v35 }
 0x154   : > { %3299 = vmatprep.subr.bf16.mxu1 %v3648_v36 }
 0x155   : > { %3119 = vmatpush3.bf16.msra.mxu0 %v3494_v6  ;;  %v3507_v6 = vld [vmem:[#allocation2 + $0x388] sm:$0xff]  }
 0x156   : > { %3120 = vmatprep.subr.bf16.mxu0 %v3497_v9  ;;  %v3508_v9 = vld [vmem:[#allocation2 + $0x380] sm:$0xff]  }
 0x157   : > { %3300 = vmatpush3.bf16.msra.mxu1 %v3468_v39 }
 0x158   : > { %3128 = vmatprep.subr.bf16.mxu1 %v3471_v46 }
 0x159   : > { %3121 = vmatpush3.bf16.msra.mxu0 %v3498_v10 }
 0x15a   : > { %3302 = vmatmul.mubr.bf16.vlgmr.msra.gmra.mxu1 %v735_v43  ;;  %3305 = vmatprep.subr.bf16.mxu0 %v3648_v36 }
 0x15b   : > { %3129 = vmatpush3.bf16.msra.mxu1 %v3472_v47 }
 0x15c   : > { %3130 = vmatprep.subr.bf16.mxu1 %v3475_v51 }
 0x15f   : > { %3131 = vmatpush3.bf16.msra.mxu1 %v3476_v52 }
 0x160   : > { %3132 = vmatprep.subr.bf16.mxu1 %v3479_v55 }
 0x163   : > { %3133 = vmatpush3.bf16.msra.mxu1 %v3480_v56 }
 0x164   : > { %3134 = vmatprep.subr.bf16.mxu1 %v3483_v59 }
 0x167   : > { %3135 = vmatpush3.bf16.msra.mxu1 %v3484_v60  ;;  %v3501_v60 = vld [vmem:[#allocation2 + $0x3b8] sm:$0xff]  }
 0x168   : > { %3136 = vmatprep.subr.bf16.mxu1 %v3487_v63 }
 0x16b   : > { %3137 = vmatpush3.bf16.msra.mxu1 %v3488_v0 }
 0x16c   : > { %3138 = vmatprep.subr.bf16.mxu1 %v3491_v3  ;;  %v3504_v3 = vld [vmem:[#allocation2 + $0x3a0] sm:$0xff]  }
 0x16f   : > { %3139 = vmatpush3.bf16.msra.mxu1 %v3492_v4  ;;  %v3505_v4 = vld [vmem:[#allocation2 + $0x398] sm:$0xff]  }
 0x170   : > { %3140 = vmatprep.subr.bf16.mxu1 %v3495_v7 }
 0x173   : > { %3141 = vmatpush3.bf16.msra.mxu1 %v3496_v8 }
 0x174   : > { %3142 = vmatprep.subr.bf16.mxu1 %v3499_v11 }
 0x177   : > { %3143 = vmatpush3.bf16.msra.mxu1 %v3500_v12 }
 0x1fa   : > { %v3069_v13 = vpop.f32.mrf.mxu1 }
 0x1fb   : > { %v3091_v15 = vpop.f32.mrf.mxu0 }
 0x1fc   : > { %v3070_v14 = vpop.f32.mrf.mxu1 }
 0x1fd   : > { %v3092_v17 = vpop.f32.mrf.mxu0  ;;  %v3071_v18 = vadd.f32 %v3070_v14, %v3069_v13  ;;  %v3509_v14 = vld [vmem:[#allocation2 + $0x438] sm:$0xff]  }
 0x1fe   : > { %v3072_v16 = vpop.f32.mrf.mxu1  ;;  %v3093_v24 = vadd.f32 %v3092_v17, %v3091_v15  ;;  %v3510_v15 = vld [vmem:[#allocation2 + $0x3f8] sm:$0xff]   ;;  %3159 = vmatprep.subr.bf16.mxu1 %v3509_v14 }
 0x1ff   : > { %v3094_v21 = vpop.f32.mrf.mxu0  ;;  %v1100_v22 = vadd.f32 %v3071_v18, %v2813_v19  ;;  %v3512_v17 = vld [vmem:[#allocation2 + $0x478] sm:$0xff]   ;;  %v3513_v18 = vld [vmem:[#allocation2 + $0x430] sm:$0xff]  }
 0x200   : > { %v3073_v20 = vpop.f32.mrf.mxu1 }
 0x201   : > { %v3074_v23 = vadd.f32 %v3073_v20, %v3072_v16  ;;  %v3095_v25 = vpop.f32.mrf.mxu0  ;;  %v1141_v27 = vadd.f32 %v3093_v24, %v1100_v22  ;;  %v3511_v16 = vld [vmem:[#allocation2 + $0x4b8] sm:$0xff]   ;;  %v3515_v20 = vld [vmem:[#allocation2 + $0x4b0] sm:$0xff]   ;;  %v3517_v22 = vld [vmem:[#allocation2 + $0x428] sm:$0xff]  }
 0x202   : > { %v3096_v29 = vadd.f32 %v3095_v25, %v3094_v21  ;;  %v3516_v21 = vld [vmem:[#allocation2 + $0x470] sm:$0xff]   ;;  %v3519_v24 = vld [vmem:[#allocation2 + $0x4a8] sm:$0xff]  }
 0x203   : > { %v1103_v26 = vadd.f32 %v3074_v23, %v2813_v19  ;;  %v3514_v19 = vld [vmem:[#allocation2 + $0x3f0] sm:$0xff]   ;;  %v3518_v23 = vld [vmem:[#allocation2 + $0x3e8] sm:$0xff]  }
 0x204   : > { %v3520_v25 = vld [vmem:[#allocation2 + $0x468] sm:$0xff]  }
 0x205   : > { %v1144_v32 = vadd.f32 %v3096_v29, %v1103_v26  ;;  %v3521_v26 = vld [vmem:[#allocation2 + $0x420] sm:$0xff]  }
 0x206   : > { %v3524_v29 = vld [vmem:[#allocation2 + $0x460] sm:$0xff]  }
 0x21a   : > { %v1181_v28 = vpop.f32.mrf.mxu1 }
 0x21b   : > { %v1182_v30 = vadd.f32 %v1181_v28, %v1141_v27  ;;  %v3522_v27 = vld [vmem:[#allocation2 + $0x3e0] sm:$0xff]  }
 0x21c   : > { %v3303_v31 = vpop.f32.mrf.mxu1  ;;  %v3523_v28 = vld [vmem:[#allocation2 + $0x4a0] sm:$0xff]  }
 0x21d   : > { %3593 = vtanh.f32 %v1182_v30  ;;  %v3525_v30 = vld [vmem:[#allocation2 + $0x418] sm:$0xff]  }
 0x21e   : > { %v1184_v33 = vpop.f32.mrf.mxu1  ;;  %v3526_v31 = vld [vmem:[#allocation2 + $0x3d8] sm:$0xff]  }
 0x21f   : > { %v1185_v34 = vadd.f32 %v1184_v33, %v1144_v32  ;;  %v3527_v32 = vld [vmem:[#allocation2 + $0x498] sm:$0xff]  }
 0x220   : > { %v3304_v35 = vpop.f32.mrf.mxu1  ;;  %v3528_v33 = vld [vmem:[#allocation2 + $0x458] sm:$0xff]  }
 0x221   : > { %3595 = vtanh.f32 %v1185_v34  ;;  %v3529_v34 = vld [vmem:[#allocation2 + $0x410] sm:$0xff]  }
 0x222   : > { %v3530_v35 = vld [vmem:[#allocation2 + $0x3d0] sm:$0xff]  }
 0x22a   : > { %v3594_v37 = vpop.eup %3593 }
 0x22b   : > { %v1192_v38 = vrot.slane %v3594_v37, 6  ;;  %v3531_v37 = vld [vmem:[#allocation2 + $0x490] sm:$0xff]  }
 0x22d   : > { %v1198_v40 = vsel %vm191_vm0, 0.0, %v1192_v38 }
 0x22e   : > { %v3596_v39 = vpop.eup %3595  ;;  %v1202_v44 = vrot.slane %v1198_v40, 1  ;;  %v1216_v48 = vrot.slane %v1198_v40, 3  ;;  %v1209_v52 = vrot.slane %v1198_v40, 2  ;;  %v1223_v10 = vrot.slane %v1198_v40, 4  ;;  %v3534_v40 = vld [vmem:[#allocation2 + $0x3c8] sm:$0xff]  }
 0x22f   : > { %v1193_v41 = vrot.slane %v3596_v39, 6  ;;  %v3533_v39 = vld [vmem:[#allocation2 + $0x408] sm:$0xff]  }
 0x231   : > { %v1194_v42 = vsel %vm191_vm0, %v1192_v38, %v1193_v41  ;;  %v1199_v43 = vsel %vm191_vm0, %v1193_v41, 0.0  ;;  %v3535_v41 = vld [vmem:[#allocation2 + $0x488] sm:$0xff]  }
 0x232   : > { %v1212_v45 = vrot.slane %v1199_v43, 2  ;;  %v1203_v46 = vrot.slane %v1194_v42, 1  ;;  %v1205_v47 = vrot.slane %v1199_v43, 1  ;;  %v1217_v49 = vrot.slane %v1194_v42, 3 }
 0x233   : > { %v1219_v51 = vrot.slane %v1199_v43, 3  ;;  %v1210_v53 = vrot.slane %v1194_v42, 2  ;;  %v2902_v62 = vpack.c.bf16 %v1194_v42, %v1192_v38  ;;  %v1226_v7 = vrot.slane %v1199_v43, 4  ;;  %v3532_v38 = vld [vmem:[#allocation2 + $0x450] sm:$0xff]   ;;  %v3537_v43 = vld [vmem:[#allocation2 + $0x400] sm:$0xff]  }
 0x234   : > { %v1204_v54 = vsel %vm202_vm1, %v1202_v44, %v1203_v46  ;;  %v1206_v55 = vsel %vm202_vm1, %v1203_v46, %v1205_v47  ;;  %v1218_v57 = vsel %vm218_vm2, %v1216_v48, %v1217_v49  ;;  %v1224_v8 = vrot.slane %v1194_v42, 4  ;;  %v3536_v42 = vld [vmem:[#allocation2 + $0x448] sm:$0xff]   ;;  %v3538_v44 = vld [vmem:[#allocation2 + $0x3c0] sm:$0xff]  }
 0x235   : > { %v1231_v56 = vpack.c.bf16 %v1206_v55, %v1204_v54  ;;  %v1220_v58 = vsel %vm218_vm2, %v1217_v49, %v1219_v51  ;;  %v1211_v59 = vsel %vm210_vm4, %v1209_v52, %v1210_v53  ;;  %v1213_v63 = vsel %vm210_vm4, %v1210_v53, %v1212_v45  ;;  %v3539_v45 = vld [vmem:[#allocation2 + $0x480] sm:$0xff]  }
 0x236   : > { %v1233_v61 = vpack.c.bf16 %v1220_v58, %v1218_v57  ;;  %v1232_v0 = vpack.c.bf16 %v1213_v63, %v1211_v59  ;;  %v1225_v11 = vsel %vm226_vm8, %v1223_v10, %v1224_v8  ;;  %v1227_v12 = vsel %vm226_vm8, %v1224_v8, %v1226_v7  ;;  %v3540_v46 = vld [vmem:[#allocation2 + $0x440] sm:$0xff]  }
 0x237   : > { %1596 = vmatprep.mubr.bf16.mxu0 %v1231_v56  ;;  %v1234_v13 = vpack.c.bf16 %v1227_v12, %v1225_v11  ;;  %v2859_v54 = vld [vmem:[%s3860_s2 + $0x2] ss:$0 sm:$0xff] }
 0x238   : > { %1637 = vmatprep.mubr.bf16.mxu1 %v1233_v61  ;;  %2903 = vmatmul.mubr.msk.bf16.vlgmr.msra.gmra.mxu0 %vm3720_vm6, %v2902_v62 }
 0x239   : > { %1638 = vmatmul.mubr.bf16.vlgmr.msra.gmra.mxu1 %v1232_v0  ;;  %3306 = vmatpush3.bf16.msra.mxu0 %v3501_v60 }
 0x23a   : > { %3307 = vmatprep.subr.bf16.mxu0 %v3648_v36  ;;  %3321 = vmatprep.mubr.msk.bf16.mxu0 %vm3650_vm7, %v3648_v36 }
 0x23b   : > { %3160 = vmatpush3.bf16.msra.mxu1 %v3510_v15 }
 0x23c   : > { %3161 = vmatprep.subr.bf16.mxu1 %v3513_v18 }
 0x23d   : > { %3308 = vmatpush3.bf16.msra.mxu0 %v3502_v1 }
 0x23e   : > { %3309 = vmatprep.subr.bf16.mxu0 %v3648_v36 }
 0x23f   : > { %3162 = vmatpush3.bf16.msra.mxu1 %v3514_v19 }
 0x240   : > { %3163 = vmatprep.subr.bf16.mxu1 %v3517_v22 }
 0x241   : > { %3310 = vmatpush3.bf16.msra.mxu0 %v3503_v2 }
 0x242   : > { %3311 = vmatprep.subr.bf16.mxu0 %v3648_v36 }
 0x243   : > { %3164 = vmatpush3.bf16.msra.mxu1 %v3518_v23 }
 0x244   : > { %3165 = vmatprep.subr.bf16.mxu1 %v3521_v26 }
 0x245   : > { %3312 = vmatpush3.bf16.msra.mxu0 %v3504_v3 }
 0x246   : > { %3313 = vmatprep.subr.bf16.mxu0 %v3648_v36 }
 0x247   : > { %3166 = vmatpush3.bf16.msra.mxu1 %v3522_v27 }
 0x248   : > { %3167 = vmatprep.subr.bf16.mxu1 %v3525_v30 }
 0x249   : > { %3314 = vmatpush3.bf16.msra.mxu0 %v3505_v4 }
 0x24a   : > { %3315 = vmatprep.subr.bf16.mxu0 %v3648_v36 }
 0x24b   : > { %3168 = vmatpush3.bf16.msra.mxu1 %v3526_v31 }
 0x24c   : > { %3169 = vmatprep.subr.bf16.mxu1 %v3529_v34  ;;  %v3542_v34 = vld [vmem:[#allocation2 + $0x4f0] sm:$0xff]  }
 0x24d   : > { %3316 = vmatpush3.bf16.msra.mxu0 %v3506_v5 }
 0x24e   : > { %3317 = vmatprep.subr.bf16.mxu0 %v3648_v36 }
 0x24f   : > { %3170 = vmatpush3.bf16.msra.mxu1 %v3530_v35  ;;  %v3543_v35 = vld [vmem:[#allocation2 + $0x4e8] sm:$0xff]  }
 0x250   : > { %3171 = vmatprep.subr.bf16.mxu1 %v3533_v39  ;;  %v3546_v39 = vld [vmem:[#allocation2 + $0x4d0] sm:$0xff]  }
 0x251   : > { %3318 = vmatpush3.bf16.msra.mxu0 %v3507_v6 }
 0x252   : > { %3319 = vmatprep.subr.bf16.mxu0 %v3648_v36 }
 0x253   : > { %3172 = vmatpush3.bf16.msra.mxu1 %v3534_v40  ;;  %v3547_v40 = vld [vmem:[#allocation2 + $0x4c8] sm:$0xff]  }
 0x254   : > { %3173 = vmatprep.subr.bf16.mxu1 %v3537_v43  ;;  %v3548_v43 = vld [vmem:[#allocation2 + $0x4c0] sm:$0xff]  }
 0x255   : > { %3320 = vmatpush3.bf16.msra.mxu0 %v3508_v9 }
 0x256   : > { %3181 = vmatprep.subr.bf16.mxu0 %v3511_v16 }
 0x257   : > { %3174 = vmatpush3.bf16.msra.mxu1 %v3538_v44 }
 0x258   : > { %3322 = vmatmul.mubr.bf16.vlgmr.msra.gmra.mxu0 %v1234_v13  ;;  %3325 = vmatprep.subr.bf16.mxu1 %v3648_v36 }
 0x259   : > { %3182 = vmatpush3.bf16.msra.mxu0 %v3512_v17 }
 0x25a   : > { %3183 = vmatprep.subr.bf16.mxu0 %v3515_v20 }
 0x25d   : > { %3184 = vmatpush3.bf16.msra.mxu0 %v3516_v21 }
 0x25e   : > { %3185 = vmatprep.subr.bf16.mxu0 %v3519_v24 }
 0x261   : > { %3186 = vmatpush3.bf16.msra.mxu0 %v3520_v25 }
 0x262   : > { %3187 = vmatprep.subr.bf16.mxu0 %v3523_v28 }
 0x265   : > { %3188 = vmatpush3.bf16.msra.mxu0 %v3524_v29  ;;  %v3541_v29 = vld [vmem:[#allocation2 + $0x4f8] sm:$0xff]  }
 0x266   : > { %3189 = vmatprep.subr.bf16.mxu0 %v3527_v32 }
 0x269   : > { %3190 = vmatpush3.bf16.msra.mxu0 %v3528_v33 }
 0x26a   : > { %3191 = vmatprep.subr.bf16.mxu0 %v3531_v37  ;;  %v3544_v37 = vld [vmem:[#allocation2 + $0x4e0] sm:$0xff]  }
 0x26d   : > { %3192 = vmatpush3.bf16.msra.mxu0 %v3532_v38  ;;  %v3545_v38 = vld [vmem:[#allocation2 + $0x4d8] sm:$0xff]  }
 0x26e   : > { %3193 = vmatprep.subr.bf16.mxu0 %v3535_v41 }
 0x271   : > { %3194 = vmatpush3.bf16.msra.mxu0 %v3536_v42 }
 0x272   : > { %3195 = vmatprep.subr.bf16.mxu0 %v3539_v45 }
 0x275   : > { %3196 = vmatpush3.bf16.msra.mxu0 %v3540_v46 }
 0x2f8   : > { %v3122_v47 = vpop.f32.mrf.mxu0 }
 0x2f9   : > { %v3144_v49 = vpop.f32.mrf.mxu1 }
 0x2fa   : > { %v3123_v48 = vpop.f32.mrf.mxu0 }
 0x2fb   : > { %v3145_v52 = vpop.f32.mrf.mxu1  ;;  %v3124_v53 = vadd.f32 %v3123_v48, %v3122_v47  ;;  %v3549_v48 = vld [vmem:[#allocation2 + $0x578] sm:$0xff]  }
 0x2fc   : > { %v3125_v51 = vpop.f32.mrf.mxu0  ;;  %v3146_v59 = vadd.f32 %v3145_v52, %v3144_v49  ;;  %v3550_v49 = vld [vmem:[#allocation2 + $0x538] sm:$0xff]   ;;  %3212 = vmatprep.subr.bf16.mxu0 %v3549_v48 }
 0x2fd   : > { %v3147_v56 = vpop.f32.mrf.mxu1  ;;  %v1599_v57 = vadd.f32 %v3124_v53, %v2859_v54  ;;  %v3552_v52 = vld [vmem:[#allocation2 + $0x5b8] sm:$0xff]   ;;  %v3553_v53 = vld [vmem:[#allocation2 + $0x570] sm:$0xff]  }
 0x2fe   : > { %v3126_v55 = vpop.f32.mrf.mxu0 }
 0x2ff   : > { %v3127_v58 = vadd.f32 %v3126_v55, %v3125_v51  ;;  %v3148_v60 = vpop.f32.mrf.mxu1  ;;  %v1640_v62 = vadd.f32 %v3146_v59, %v1599_v57  ;;  %v3551_v51 = vld [vmem:[#allocation2 + $0x5f8] sm:$0xff]   ;;  %v3555_v55 = vld [vmem:[#allocation2 + $0x5f0] sm:$0xff]   ;;  %v3557_v57 = vld [vmem:[#allocation2 + $0x568] sm:$0xff]  }
 0x300   : > { %v3149_v0 = vadd.f32 %v3148_v60, %v3147_v56  ;;  %v3556_v56 = vld [vmem:[#allocation2 + $0x5b0] sm:$0xff]   ;;  %v3559_v59 = vld [vmem:[#allocation2 + $0x5e8] sm:$0xff]  }
 0x301   : > { %v1602_v61 = vadd.f32 %v3127_v58, %v2859_v54  ;;  %v3554_v54 = vld [vmem:[#allocation2 + $0x530] sm:$0xff]   ;;  %v3558_v58 = vld [vmem:[#allocation2 + $0x528] sm:$0xff]  }
 0x302   : > { %v3560_v60 = vld [vmem:[#allocation2 + $0x5a8] sm:$0xff]  }
 0x303   : > { %v1643_v3 = vadd.f32 %v3149_v0, %v1602_v61  ;;  %v3561_v61 = vld [vmem:[#allocation2 + $0x560] sm:$0xff]  }
 0x304   : > { %v3564_v0 = vld [vmem:[#allocation2 + $0x5a0] sm:$0xff]  }
 0x318   : > { %v1680_v63 = vpop.f32.mrf.mxu0 }
 0x319   : > { %v1681_v1 = vadd.f32 %v1680_v63, %v1640_v62  ;;  %v3562_v62 = vld [vmem:[#allocation2 + $0x520] sm:$0xff]  }
 0x31a   : > { %v3323_v2 = vpop.f32.mrf.mxu0  ;;  %v3563_v63 = vld [vmem:[#allocation2 + $0x5e0] sm:$0xff]  }
 0x31b   : > { %3597 = vtanh.f32 %v1681_v1  ;;  %v3565_v1 = vld [vmem:[#allocation2 + $0x558] sm:$0xff]  }
 0x31c   : > { %v1683_v4 = vpop.f32.mrf.mxu0  ;;  %v3566_v2 = vld [vmem:[#allocation2 + $0x518] sm:$0xff]  }
 0x31d   : > { %v1684_v5 = vadd.f32 %v1683_v4, %v1643_v3  ;;  %v3567_v3 = vld [vmem:[#allocation2 + $0x5d8] sm:$0xff]  }
 0x31e   : > { %v3324_v6 = vpop.f32.mrf.mxu0  ;;  %v3568_v4 = vld [vmem:[#allocation2 + $0x598] sm:$0xff]  }
 0x31f   : > { %3599 = vtanh.f32 %v1684_v5  ;;  %v3569_v5 = vld [vmem:[#allocation2 + $0x550] sm:$0xff]  }
 0x320   : > { %v3570_v6 = vld [vmem:[#allocation2 + $0x510] sm:$0xff]  }
 0x328   : > { %v3598_v7 = vpop.eup %3597 }
 0x329   : > { %v1691_v8 = vrot.slane %v3598_v7, 6  ;;  %v3571_v7 = vld [vmem:[#allocation2 + $0x5d0] sm:$0xff]  }
 0x32b   : > { %v1697_v10 = vsel %vm191_vm0, 0.0, %v1691_v8 }
 0x32c   : > { %v3600_v9 = vpop.eup %3599  ;;  %v1701_v14 = vrot.slane %v1697_v10, 1  ;;  %v1715_v18 = vrot.slane %v1697_v10, 3  ;;  %v1708_v21 = vrot.slane %v1697_v10, 2  ;;  %v1722_v44 = vrot.slane %v1697_v10, 4  ;;  %v3574_v10 = vld [vmem:[#allocation2 + $0x508] sm:$0xff]  }
 0x32d   : > { %v1692_v11 = vrot.slane %v3600_v9, 6  ;;  %v3573_v9 = vld [vmem:[#allocation2 + $0x548] sm:$0xff]  }
 0x32f   : > { %v1693_v12 = vsel %vm191_vm0, %v1691_v8, %v1692_v11  ;;  %v1698_v13 = vsel %vm191_vm0, %v1692_v11, 0.0  ;;  %v3575_v11 = vld [vmem:[#allocation2 + $0x5c8] sm:$0xff]  }
 0x330   : > { %v1711_v15 = vrot.slane %v1698_v13, 2  ;;  %v1702_v16 = vrot.slane %v1693_v12, 1  ;;  %v1704_v17 = vrot.slane %v1698_v13, 1  ;;  %v1716_v19 = vrot.slane %v1693_v12, 3 }
 0x331   : > { %v1718_v20 = vrot.slane %v1698_v13, 3  ;;  %v1709_v22 = vrot.slane %v1693_v12, 2  ;;  %v2948_v31 = vpack.c.bf16 %v1693_v12, %v1691_v8  ;;  %v1725_v41 = vrot.slane %v1698_v13, 4  ;;  %v3572_v8 = vld [vmem:[#allocation2 + $0x590] sm:$0xff]   ;;  %v3577_v13 = vld [vmem:[#allocation2 + $0x540] sm:$0xff]  }
 0x332   : > { %v1703_v23 = vsel %vm202_vm1, %v1701_v14, %v1702_v16  ;;  %v1705_v24 = vsel %vm202_vm1, %v1702_v16, %v1704_v17  ;;  %v1717_v26 = vsel %vm218_vm2, %v1715_v18, %v1716_v19  ;;  %v1723_v42 = vrot.slane %v1693_v12, 4  ;;  %v3576_v12 = vld [vmem:[#allocation2 + $0x588] sm:$0xff]   ;;  %v3578_v14 = vld [vmem:[#allocation2 + $0x500] sm:$0xff]  }
 0x333   : > { %v1730_v25 = vpack.c.bf16 %v1705_v24, %v1703_v23  ;;  %v1719_v27 = vsel %vm218_vm2, %v1716_v19, %v1718_v20  ;;  %v1710_v28 = vsel %vm210_vm4, %v1708_v21, %v1709_v22  ;;  %v1712_v32 = vsel %vm210_vm4, %v1709_v22, %v1711_v15  ;;  %v3579_v15 = vld [vmem:[#allocation2 + $0x5c0] sm:$0xff]  }
 0x334   : > { %v1732_v30 = vpack.c.bf16 %v1719_v27, %v1717_v26  ;;  %v1731_v33 = vpack.c.bf16 %v1712_v32, %v1710_v28  ;;  %v1724_v45 = vsel %vm226_vm8, %v1722_v44, %v1723_v42  ;;  %v1726_v46 = vsel %vm226_vm8, %v1723_v42, %v1725_v41  ;;  %v3580_v16 = vld [vmem:[#allocation2 + $0x580] sm:$0xff]  }
 0x335   : > { %2095 = vmatprep.mubr.bf16.mxu1 %v1730_v25  ;;  %v1733_v47 = vpack.c.bf16 %v1726_v46, %v1724_v45  ;;  %v2905_v23 = vld [vmem:[%s3860_s2 + $0x3] ss:$0 sm:$0xff] }
 0x336   : > { %2136 = vmatprep.mubr.bf16.mxu0 %v1732_v30  ;;  %2949 = vmatmul.mubr.msk.bf16.vlgmr.msra.gmra.mxu1 %vm3720_vm6, %v2948_v31 }
 0x337   : > { %2137 = vmatmul.mubr.bf16.vlgmr.msra.gmra.mxu0 %v1731_v33  ;;  %3326 = vmatpush3.bf16.msra.mxu1 %v3541_v29 }
 0x338   : > { %3327 = vmatprep.subr.bf16.mxu1 %v3648_v36  ;;  %3341 = vmatprep.mubr.msk.bf16.mxu1 %vm3650_vm7, %v3648_v36 }
 0x339   : > { %3213 = vmatpush3.bf16.msra.mxu0 %v3550_v49 }
 0x33a   : > { %3214 = vmatprep.subr.bf16.mxu0 %v3553_v53 }
 0x33b   : > { %3328 = vmatpush3.bf16.msra.mxu1 %v3542_v34 }
 0x33c   : > { %3329 = vmatprep.subr.bf16.mxu1 %v3648_v36 }
 0x33d   : > { %3215 = vmatpush3.bf16.msra.mxu0 %v3554_v54 }
 0x33e   : > { %3216 = vmatprep.subr.bf16.mxu0 %v3557_v57 }
 0x33f   : > { %3330 = vmatpush3.bf16.msra.mxu1 %v3543_v35 }
 0x340   : > { %3331 = vmatprep.subr.bf16.mxu1 %v3648_v36 }
 0x341   : > { %3217 = vmatpush3.bf16.msra.mxu0 %v3558_v58 }
 0x342   : > { %3218 = vmatprep.subr.bf16.mxu0 %v3561_v61 }
 0x343   : > { %3332 = vmatpush3.bf16.msra.mxu1 %v3544_v37 }
 0x344   : > { %3333 = vmatprep.subr.bf16.mxu1 %v3648_v36 }
 0x345   : > { %3219 = vmatpush3.bf16.msra.mxu0 %v3562_v62 }
 0x346   : > { %3220 = vmatprep.subr.bf16.mxu0 %v3565_v1 }
 0x347   : > { %3334 = vmatpush3.bf16.msra.mxu1 %v3545_v38 }
 0x348   : > { %3335 = vmatprep.subr.bf16.mxu1 %v3648_v36 }
 0x349   : > { %3221 = vmatpush3.bf16.msra.mxu0 %v3566_v2 }
 0x34a   : > { %3222 = vmatprep.subr.bf16.mxu0 %v3569_v5  ;;  %v3582_v5 = vld [vmem:[#allocation2 + $0x630] sm:$0xff]  }
 0x34b   : > { %3336 = vmatpush3.bf16.msra.mxu1 %v3546_v39 }
 0x34c   : > { %3337 = vmatprep.subr.bf16.mxu1 %v3648_v36 }
 0x34d   : > { %3223 = vmatpush3.bf16.msra.mxu0 %v3570_v6  ;;  %v3583_v6 = vld [vmem:[#allocation2 + $0x628] sm:$0xff]  }
 0x34e   : > { %3224 = vmatprep.subr.bf16.mxu0 %v3573_v9  ;;  %v3587_v9 = vld [vmem:[#allocation2 + $0x608] sm:$0xff]  }
 0x34f   : > { %3338 = vmatpush3.bf16.msra.mxu1 %v3547_v40 }
 0x350   : > { %3339 = vmatprep.subr.bf16.mxu1 %v3648_v36 }
 0x351   : > { %3225 = vmatpush3.bf16.msra.mxu0 %v3574_v10 }
 0x352   : > { %3226 = vmatprep.subr.bf16.mxu0 %v3577_v13 }
 0x353   : > { %3340 = vmatpush3.bf16.msra.mxu1 %v3548_v43 }
 0x354   : > { %3234 = vmatprep.subr.bf16.mxu1 %v3551_v51 }
 0x355   : > { %3227 = vmatpush3.bf16.msra.mxu0 %v3578_v14 }
 0x356   : > { %3342 = vmatmul.mubr.bf16.vlgmr.msra.gmra.mxu1 %v1733_v47  ;;  %3345 = vmatprep.subr.bf16.mxu0 %v3648_v36 }
 0x357   : > { %3235 = vmatpush3.bf16.msra.mxu1 %v3552_v52 }
 0x358   : > { %3236 = vmatprep.subr.bf16.mxu1 %v3555_v55 }
 0x35b   : > { %3237 = vmatpush3.bf16.msra.mxu1 %v3556_v56 }
 0x35c   : > { %3238 = vmatprep.subr.bf16.mxu1 %v3559_v59 }
 0x35f   : > { %3239 = vmatpush3.bf16.msra.mxu1 %v3560_v60 }
 0x360   : > { %3240 = vmatprep.subr.bf16.mxu1 %v3563_v63 }
 0x363   : > { %3241 = vmatpush3.bf16.msra.mxu1 %v3564_v0  ;;  %v3581_v0 = vld [vmem:[#allocation2 + $0x638] sm:$0xff]  }
 0x364   : > { %3242 = vmatprep.subr.bf16.mxu1 %v3567_v3 }
 0x367   : > { %3243 = vmatpush3.bf16.msra.mxu1 %v3568_v4 }
 0x368   : > { %3244 = vmatprep.subr.bf16.mxu1 %v3571_v7  ;;  %v3584_v7 = vld [vmem:[#allocation2 + $0x620] sm:$0xff]  }
 0x36b   : > { %3245 = vmatpush3.bf16.msra.mxu1 %v3572_v8  ;;  %v3585_v8 = vld [vmem:[#allocation2 + $0x618] sm:$0xff]  }
 0x36c   : > { %3246 = vmatprep.subr.bf16.mxu1 %v3575_v11 }
 0x36f   : > { %3247 = vmatpush3.bf16.msra.mxu1 %v3576_v12  ;;  %v3588_v12 = vld [vmem:[#allocation2 + $0x600] sm:$0xff]  }
 0x370   : > { %3248 = vmatprep.subr.bf16.mxu1 %v3579_v15 }
 0x373   : > { %3249 = vmatpush3.bf16.msra.mxu1 %v3580_v16 }
 0x3f6   : > { %v3175_v17 = vpop.f32.mrf.mxu1 }
 0x3f7   : > { %v3197_v19 = vpop.f32.mrf.mxu0 }
 0x3f8   : > { %v3176_v18 = vpop.f32.mrf.mxu1 }
 0x3f9   : > { %v3198_v21 = vpop.f32.mrf.mxu0  ;;  %v3177_v22 = vadd.f32 %v3176_v18, %v3175_v17 }
 0x3fa   : > { %v3178_v20 = vpop.f32.mrf.mxu1  ;;  %v3199_v28 = vadd.f32 %v3198_v21, %v3197_v19 }
 0x3fb   : > { %v3200_v25 = vpop.f32.mrf.mxu0  ;;  %v2098_v26 = vadd.f32 %v3177_v22, %v2905_v23 }
 0x3fc   : > { %v3179_v24 = vpop.f32.mrf.mxu1 }
 0x3fd   : > { %v3180_v27 = vadd.f32 %v3179_v24, %v3178_v20  ;;  %v3201_v29 = vpop.f32.mrf.mxu0  ;;  %v2139_v31 = vadd.f32 %v3199_v28, %v2098_v26 }
 0x3fe   : > { %v3202_v33 = vadd.f32 %v3201_v29, %v3200_v25 }
 0x3ff   : > { %v2101_v30 = vadd.f32 %v3180_v27, %v2905_v23  ;;  %v2951_v23 = vld [vmem:[%s3860_s2 + $0x4] ss:$0 sm:$0xff] }
 0x401   : > { %v2142_v37 = vadd.f32 %v3202_v33, %v2101_v30 }
 0x416   : > { %v2179_v32 = vpop.f32.mrf.mxu1 }
 0x417   : > { %v2180_v34 = vadd.f32 %v2179_v32, %v2139_v31 }
 0x418   : > { %v3343_v35 = vpop.f32.mrf.mxu1 }
 0x419   : > { %3601 = vtanh.f32 %v2180_v34  ;;  %v3605_v35 = vld [vmem:[%s3709_s25] sm:$0xff] }
 0x41a   : > { %v2182_v38 = vpop.f32.mrf.mxu1 }
 0x41b   : > { %v2183_v39 = vadd.f32 %v2182_v38, %v2142_v37 }
 0x41c   : > { %v3344_v40 = vpop.f32.mrf.mxu1 }
 0x41d   : > { %3603 = vtanh.f32 %v2183_v39 }
 0x426   : > { %v3602_v41 = vpop.eup %3601 }
 0x427   : > { %v2190_v42 = vrot.slane %v3602_v41, 6 }
 0x429   : > { %v2196_v44 = vsel %vm191_vm0, 0.0, %v2190_v42 }
 0x42a   : > { %v3604_v43 = vpop.eup %3603  ;;  %v2200_v48 = vrot.slane %v2196_v44, 1  ;;  %v2214_v53 = vrot.slane %v2196_v44, 3  ;;  %v2207_v56 = vrot.slane %v2196_v44, 2  ;;  %v2221_v13 = vrot.slane %v2196_v44, 4 }
 0x42b   : > { %v2191_v45 = vrot.slane %v3604_v43, 6 }
 0x42d   : > { %v2192_v46 = vsel %vm191_vm0, %v2190_v42, %v2191_v45  ;;  %v2197_v47 = vsel %vm191_vm0, %v2191_v45, 0.0 }
 0x42e   : > { %v2210_v49 = vrot.slane %v2197_v47, 2  ;;  %v2201_v51 = vrot.slane %v2192_v46, 1  ;;  %v2203_v52 = vrot.slane %v2197_v47, 1  ;;  %v2215_v54 = vrot.slane %v2192_v46, 3 }
 0x42f   : > { %v2217_v55 = vrot.slane %v2197_v47, 3  ;;  %v2208_v57 = vrot.slane %v2192_v46, 2  ;;  %v2994_v2 = vpack.c.bf16 %v2192_v46, %v2190_v42  ;;  %v2224_v10 = vrot.slane %v2197_v47, 4  ;;  %v3606_v42 = vld [vmem:[%s3709_s25 + $0x8] sm:$0xff] }
 0x430   : > { %v2202_v58 = vsel %vm202_vm1, %v2200_v48, %v2201_v51  ;;  %v2204_v59 = vsel %vm202_vm1, %v2201_v51, %v2203_v52  ;;  %v2216_v61 = vsel %vm218_vm2, %v2214_v53, %v2215_v54  ;;  %v2222_v11 = vrot.slane %v2192_v46, 4 }
 0x431   : > { %v2229_v60 = vpack.c.bf16 %v2204_v59, %v2202_v58  ;;  %v2218_v62 = vsel %vm218_vm2, %v2215_v54, %v2217_v55  ;;  %v2209_v63 = vsel %vm210_vm4, %v2207_v56, %v2208_v57  ;;  %v2211_v3 = vsel %vm210_vm4, %v2208_v57, %v2210_v49 }
 0x432   : > { %v2231_v1 = vpack.c.bf16 %v2218_v62, %v2216_v61  ;;  %v2230_v4 = vpack.c.bf16 %v2211_v3, %v2209_v63  ;;  %v2223_v14 = vsel %vm226_vm8, %v2221_v13, %v2222_v11  ;;  %v2225_v15 = vsel %vm226_vm8, %v2222_v11, %v2224_v10 }
 0x433   : > { %2594 = vmatprep.mubr.bf16.mxu0 %v2229_v60  ;;  %v2232_v16 = vpack.c.bf16 %v2225_v15, %v2223_v14 }
 0x434   : > { %2635 = vmatprep.mubr.bf16.mxu1 %v2231_v1  ;;  %2995 = vmatmul.mubr.msk.bf16.vlgmr.msra.gmra.mxu0 %vm3720_vm6, %v2994_v2 }
 0x435   : > { %2636 = vmatmul.mubr.bf16.vlgmr.msra.gmra.mxu1 %v2230_v4  ;;  %3346 = vmatpush3.bf16.msra.mxu0 %v3581_v0 }
 0x436   : > { %3347 = vmatprep.subr.bf16.mxu0 %v3648_v36  ;;  %3361 = vmatprep.mubr.msk.bf16.mxu0 %vm3650_vm7, %v3648_v36 }
 0x439   : > { %3348 = vmatpush3.bf16.msra.mxu0 %v3582_v5 }
 0x43a   : > { %3349 = vmatprep.subr.bf16.mxu0 %v3648_v36 }
 0x43d   : > { %3350 = vmatpush3.bf16.msra.mxu0 %v3583_v6 }
 0x43e   : > { %3351 = vmatprep.subr.bf16.mxu0 %v3648_v36 }
 0x441   : > { %3352 = vmatpush3.bf16.msra.mxu0 %v3584_v7 }
 0x442   : > { %3353 = vmatprep.subr.bf16.mxu0 %v3648_v36 }
 0x445   : > { %3354 = vmatpush3.bf16.msra.mxu0 %v3585_v8 }
 0x446   : > { %3355 = vmatprep.subr.bf16.mxu0 %v3648_v36 }
 0x449   : > { %3356 = vmatpush3.bf16.msra.mxu0 %v3586_v50 }
 0x44a   : > { %3357 = vmatprep.subr.bf16.mxu0 %v3648_v36 }
 0x44d   : > { %3358 = vmatpush3.bf16.msra.mxu0 %v3587_v9 }
 0x44e   : > { %3359 = vmatprep.subr.bf16.mxu0 %v3648_v36 }
 0x451   : > { %3360 = vmatpush3.bf16.msra.mxu0 %v3588_v12 }
 0x454   : > { %3362 = vmatmul.mubr.bf16.vlgmr.msra.gmra.mxu0 %v2232_v16 }
 0x4f4   : > { %v3228_v17 = vpop.f32.mrf.mxu0 }
 0x4f5   : > { %v3250_v19 = vpop.f32.mrf.mxu1 }
 0x4f6   : > { %v3229_v18 = vpop.f32.mrf.mxu0 }
 0x4f7   : > { %v3251_v21 = vpop.f32.mrf.mxu1  ;;  %v3230_v22 = vadd.f32 %v3229_v18, %v3228_v17 }
 0x4f8   : > { %v3231_v20 = vpop.f32.mrf.mxu0  ;;  %v3252_v27 = vadd.f32 %v3251_v21, %v3250_v19 }
 0x4f9   : > { %v3253_v24 = vpop.f32.mrf.mxu1  ;;  %v2597_v25 = vadd.f32 %v3230_v22, %v2951_v23 }
 0x4fa   : > { %v3232_v36 = vpop.f32.mrf.mxu0 }
 0x4fb   : > { %v3233_v26 = vadd.f32 %v3232_v36, %v3231_v20  ;;  %v3254_v28 = vpop.f32.mrf.mxu1  ;;  %v2638_v30 = vadd.f32 %v3252_v27, %v2597_v25 }
 0x4fc   : > { %v3255_v32 = vadd.f32 %v3254_v28, %v3253_v24 }
 0x4fd   : > { %v2600_v29 = vadd.f32 %v3233_v26, %v2951_v23 }
 0x4ff   : > { %v2641_v38 = vadd.f32 %v3255_v32, %v2600_v29 }
 0x514   : > { %v2678_v31 = vpop.f32.mrf.mxu0 }
 0x515   : > { %v2679_v33 = vadd.f32 %v2678_v31, %v2638_v30 }
 0x516   : > { %v3363_v34 = vpop.f32.mrf.mxu0 }
 0x517   : > { %v2685_v37 = vadd.f32 %v3605_v35, %v2679_v33 }
 0x518   : > { %v2681_v39 = vpop.f32.mrf.mxu0 }
 0x519   : > { %2687 = vst [vmem:[%s185_s11] sm:$0xff] %v2685_v37  ;;  %v2682_v40 = vadd.f32 %v2681_v39, %v2641_v38 }
 0x51a   : > { %v3364_v41 = vpop.f32.mrf.mxu0 }
 0x51b   : > { %v2686_v43 = vadd.f32 %v3606_v42, %v2682_v40 }
 0x51d   : > { %2688 = vst [vmem:[%s185_s11 + $0x8] sm:$0xff] %v2686_v43 }
 0x51e PF: > { %s14_s12 = sadd.s32 1, %s3643_s12  }
 0x51f   : > { %p11_p1 = scmp.ge.s32.totalorder %s14_s12, 4  }
 0x521   :  { %13 = sbr.rel (!%p11_p1) target bundleno = 1 (0x1), region = 75 }
 0x526   :  { %2710 = vsyncpa [#allocation3], 1 }
 0x527   :  { %2712 = vsyncpa [#allocation3 + $0x1], 1 }

</bundles_post_ra>
